<compile_context>
chip_gen: v5e
topology: v5e:2x2
jax: 0.10.0
libtpu: 0.0.40
codegen_flags: <defaults>
</compile_context>

<pallas_src>
import functools

import jax
import jax.numpy as jnp
from jax import lax
from jax.experimental import pallas as pl
from jax.experimental.pallas import tpu as pltpu


def _gelu_exact(x):
    # nn.GELU() default: 0.5 * x * (1 + erf(x / sqrt(2)))
    return 0.5 * x * (1.0 + lax.erf(x * jnp.float32(0.7071067811865476)))


def micro_block_kernel(x_ref, w1_ref, b1_ref, wd_ref, b2_ref, o_ref, *,
                       img_h, chans):
    R, L = x_ref.shape            # R = images_per_block * H, L = W * C
    H, C = img_h, chans

    # ---- conv1: 1x1 pointwise conv as a lane-dense MXU matmul (BN1 scale folded
    #      into the weight), then bias + GELU ----
    x = x_ref[...].astype(jnp.float32)                               # (R, L)
    y = jnp.dot(x, w1_ref[...], preferred_element_type=jnp.float32)  # (R, L)
    y = _gelu_exact(y + b1_ref[...])

    # ---- conv2: depthwise 3x3, padding=1, via rolls.  Lane (w +- 1) halo masks
    #      are pre-baked into the tap weights; only the row (h +- 1) halo needs
    #      in-kernel masking (also stops taps leaking across image boundaries). ----
    wd = wd_ref[...]                                                 # (9, L) taps (s2-scaled, halo-masked)

    row = lax.broadcasted_iota(jnp.int32, (R, L), 0)
    h_in = row % H                      # row index within its image
    zero = jnp.float32(0.0)
    y_up = jnp.where(h_in > 0, pltpu.roll(y, 1, 0), zero)            # y[h-1, :]
    y_dn = jnp.where(h_in < H - 1, pltpu.roll(y, R - 1, 0), zero)    # y[h+1, :]

    def row_taps(v, k0):
        # wrap-around garbage from the lane rolls is killed by the zeroed taps
        left = pltpu.roll(v, C, 1)                                   # [.., w-1]
        right = pltpu.roll(v, L - C, 1)                              # [.., w+1]
        return (left * wd[k0:k0 + 1, :] + v * wd[k0 + 1:k0 + 2, :]
                + right * wd[k0 + 2:k0 + 3, :])

    z = row_taps(y_up, 0) + row_taps(y, 3) + row_taps(y_dn, 6)
    z = _gelu_exact(z + b2_ref[...])                                 # BN2 bias + GELU

    # residual: conv1_out + conv2(conv1_out); lane-dense unmasked store
    o_ref[...] = (y + z).astype(o_ref.dtype)


def micro_block(x, w1, s1, b1, wd, s2, b2, *, images_per_block=None):
    """x: (N, H, W, C) NHWC. w1: (Cin, Cout). s*/b*: (1, C). wd: (3, 3, C)."""
    N, H, W, C = x.shape
    L = W * C

    # --- fold BN scales into conv weights and pre-tile to the W*C lane layout ---
    w1f = (w1 * s1).astype(jnp.float32)                              # BN1 scale -> columns of w1
    w1big = jnp.kron(jnp.eye(W, dtype=w1f.dtype), w1f)               # (L, L) block-diag
    b1L = jnp.tile(b1, (1, W))                                       # (1, L)
    b2L = jnp.tile(b2, (1, W))                                       # (1, L)

    wd9 = jnp.tile(wd.reshape(9, C) * s2, (1, W))                    # (9, L), BN2 scale folded in
    lane = jnp.arange(L)
    left_ok = (lane >= C).astype(wd9.dtype)                          # kw=0 taps invalid at w == 0
    right_ok = (lane < L - C).astype(wd9.dtype)                      # kw=2 taps invalid at w == W-1
    ones = jnp.ones((L,), wd9.dtype)
    halo = jnp.stack([left_ok, ones, right_ok] * 3, axis=0)          # rows: kw = 0,1,2 per kh
    wd9 = wd9 * halo

    # --- pick images per grid step: fit a small VMEM budget, but keep >= 2
    #     grid steps when N >= 2 so the "parallel" axis can use both TCs (v7x)
    #     and block i+1's DMA overlaps block i's compute ---
    if images_per_block is None:
        budget = 2 * 1024 * 1024                                     # bytes per input block
        per_img = H * L * x.dtype.itemsize
        nb = int(max(1, min(N, budget // per_img)))
        if N >= 2:
            nb = min(nb, max(1, N // 2))
        while N % nb:                                                # largest divisor of N
            nb -= 1
        images_per_block = nb
    NB = images_per_block
    num_blocks = N // NB
    Rb = NB * H
    assert Rb % 8 == 0 or num_blocks == 1, "row block must be a multiple of 8"

    x2d = x.reshape(N * H, L)                                        # same bytes, lane-dense view

    out2d = pl.pallas_call(
        functools.partial(micro_block_kernel, img_h=H, chans=C),
        out_shape=jax.ShapeDtypeStruct((N * H, L), x.dtype),
        grid_spec=pltpu.PrefetchScalarGridSpec(
            num_scalar_prefetch=0,
            grid=(num_blocks,),
            in_specs=[
                pl.BlockSpec((Rb, L), lambda i: (i, 0)),             # x (lane-dense rows)
                pl.BlockSpec((L, L), lambda i: (0, 0)),              # kron(I_W, w1 * s1)
                pl.BlockSpec((1, L), lambda i: (0, 0)),              # b1
                pl.BlockSpec((9, L), lambda i: (0, 0)),              # depthwise taps (* s2, halo-masked)
                pl.BlockSpec((1, L), lambda i: (0, 0)),              # b2
            ],
            out_specs=pl.BlockSpec((Rb, L), lambda i: (i, 0)),
        ),
        compiler_params=pltpu.CompilerParams(
            dimension_semantics=("parallel",),
            vmem_limit_bytes=32 * 1024 * 1024),
    )(x2d, w1big, b1L, wd9, b2L)
    return out2d.reshape(N, H, W, C)


def _fold_bn(gamma, beta, mean, var, eps=1e-5):
    scale = gamma / jnp.sqrt(var + eps)
    bias = beta - mean * scale
    return scale.reshape(1, -1), bias.reshape(1, -1)


def make_params(key, nh):
    ks = jax.random.split(key, 10)
    # conv1: nn.Conv2d(nh, nh, 1, bias=False) -> torch weight (nh, nh, 1, 1)
    w1_torch = jax.random.normal(ks[0], (nh, nh), jnp.float32) * 0.1   # (Cout, Cin)
    w1 = w1_torch.T                                                    # (Cin, Cout)
    g1 = 1.0 + 0.1 * jax.random.normal(ks[1], (nh,), jnp.float32)
    be1 = 0.1 * jax.random.normal(ks[2], (nh,), jnp.float32)
    m1 = 0.1 * jax.random.normal(ks[3], (nh,), jnp.float32)
    v1 = 1.0 + 0.1 * jax.random.uniform(ks[4], (nh,), jnp.float32)
    s1, b1 = _fold_bn(g1, be1, m1, v1)
    # conv2: nn.Conv2d(nh, nh, 3, 1, 1, groups=nh, bias=False) -> (nh, 1, 3, 3)
    wd_torch = jax.random.normal(ks[5], (nh, 1, 3, 3), jnp.float32) * 0.1
    wd = jnp.transpose(wd_torch[:, 0, :, :], (1, 2, 0))                # (3, 3, C)
    g2 = 1.0 + 0.1 * jax.random.normal(ks[6], (nh,), jnp.float32)
    be2 = 0.1 * jax.random.normal(ks[7], (nh,), jnp.float32)
    m2 = 0.1 * jax.random.normal(ks[8], (nh,), jnp.float32)
    v2 = 1.0 + 0.1 * jax.random.uniform(ks[9], (nh,), jnp.float32)
    s2, b2 = _fold_bn(g2, be2, m2, v2)
    return w1, s1, b1, wd, s2, b2


def micro_block_reference(x, w1, s1, b1, wd, s2, b2):
    """Pure-JAX NHWC reference (eval-mode BN, exact GELU)."""
    N, H, W, C = x.shape
    y = jnp.einsum("nhwi,io->nhwo", x, w1)          # 1x1 conv as matmul
    y = _gelu_exact(y * s1[0] + b1[0])
    z = lax.conv_general_dilated(                    # depthwise 3x3, padding 1
        y, wd.reshape(3, 3, 1, C), window_strides=(1, 1), padding="SAME",
        dimension_numbers=("NHWC", "HWIO", "NHWC"), feature_group_count=C)
    z = _gelu_exact(z * s2[0] + b2[0])
    return y + z


if __name__ == "__main__":
    N, C, H, W = 2, 32, 16, 16   # nh = 32
    key = jax.random.PRNGKey(0)
    kx, kp = jax.random.split(key)
    x = jax.random.normal(kx, (N, H, W, C), jnp.float32)
    params = make_params(kp, C)

    out = jax.block_until_ready(micro_block(x, *params))

    ref = micro_block_reference(x, *params)
    assert out.shape == (N, H, W, C)
    assert jnp.allclose(out, ref, rtol=1e-3, atol=1e-3), (
        float(jnp.max(jnp.abs(out - ref))))
    print("KERNEL_OK")
</pallas_src>

<mosaic_0001>
module attributes {stable_mosaic.version = 11 : i64} {
  func.func @micro_block_kernel(%arg0: i32, %arg1: memref<16x512xf32, #tpu.memory_space<vmem>>, %arg2: memref<512x512xf32, #tpu.memory_space<vmem>>, %arg3: memref<1x512xf32, #tpu.memory_space<vmem>>, %arg4: memref<9x512xf32, #tpu.memory_space<vmem>>, %arg5: memref<1x512xf32, #tpu.memory_space<vmem>>, %arg6: memref<16x512xf32, #tpu.memory_space<vmem>>) attributes {dimension_semantics = [#tpu.dimension_semantics<parallel>], iteration_bounds = array<i64: 2>, scalar_prefetch = 0 : i64, scratch_operands = 0 : i64, tpu.core_type = #tpu.core_type<tc>, window_params = [{transform_indices = @transform_0, window_bounds = array<i64: 16, 512>}, {pipeline_mode = #tpu.pipeline_mode<synchronous>, transform_indices = @transform_1, window_bounds = array<i64: 512, 512>}, {pipeline_mode = #tpu.pipeline_mode<synchronous>, transform_indices = @transform_2, window_bounds = array<i64: 1, 512>}, {pipeline_mode = #tpu.pipeline_mode<synchronous>, transform_indices = @transform_3, window_bounds = array<i64: 9, 512>}, {pipeline_mode = #tpu.pipeline_mode<synchronous>, transform_indices = @transform_4, window_bounds = array<i64: 1, 512>}, {transform_indices = @transform_5, window_bounds = array<i64: 16, 512>}]} {
    %c0 = arith.constant 0 : index
    %c0_0 = arith.constant 0 : index
    %0 = vector.load %arg1[%c0, %c0_0] : memref<16x512xf32, #tpu.memory_space<vmem>>, vector<16x512xf32>
    %c0_1 = arith.constant 0 : index
    %c0_2 = arith.constant 0 : index
    %1 = vector.load %arg2[%c0_1, %c0_2] : memref<512x512xf32, #tpu.memory_space<vmem>>, vector<512x512xf32>
    %cst = arith.constant dense<0.000000e+00> : vector<16x512xf32>
    %2 = tpu.matmul %0, %1, %cst {dimension_numbers = #tpu.dot_dimension_numbers<[1], [0], [0], [1], [0, 0, 1, 1], [], []>} : vector<16x512xf32>, vector<512x512xf32>, vector<16x512xf32> -> vector<16x512xf32>
    %c0_3 = arith.constant 0 : index
    %c0_4 = arith.constant 0 : index
    %3 = vector.load %arg3[%c0_3, %c0_4] : memref<1x512xf32, #tpu.memory_space<vmem>>, vector<1x512xf32>
    %4 = vector.broadcast %3 : vector<1x512xf32> to vector<16x512xf32>
    %5 = arith.addf %2, %4 : vector<16x512xf32>
    %cst_5 = arith.constant 5.000000e-01 : f32
    %6 = vector.broadcast %cst_5 : f32 to vector<16x512xf32>
    %7 = arith.mulf %6, %5 : vector<16x512xf32>
    %cst_6 = arith.constant 0.707106769 : f32
    %8 = vector.broadcast %cst_6 : f32 to vector<16x512xf32>
    %9 = arith.mulf %5, %8 : vector<16x512xf32>
    %10 = math.erf %9 : vector<16x512xf32>
    %cst_7 = arith.constant 1.000000e+00 : f32
    %11 = vector.broadcast %cst_7 : f32 to vector<16x512xf32>
    %12 = arith.addf %11, %10 : vector<16x512xf32>
    %13 = arith.mulf %7, %12 : vector<16x512xf32>
    %c0_8 = arith.constant 0 : index
    %c0_9 = arith.constant 0 : index
    %14 = vector.load %arg4[%c0_8, %c0_9] : memref<9x512xf32, #tpu.memory_space<vmem>>, vector<9x512xf32>
    %15 = tpu.iota {dimensions = array<i32: 0>} : vector<16x512xi32>
    %c16_i32 = arith.constant 16 : i32
    %c0_i32 = arith.constant 0 : i32
    %16 = arith.cmpi eq, %c16_i32, %c0_i32 : i32
    %c1_i32 = arith.constant 1 : i32
    %17 = arith.select %16, %c1_i32, %c16_i32 : i32
    %18 = vector.broadcast %17 : i32 to vector<16x512xi32>
    %19 = arith.remsi %15, %18 : vector<16x512xi32>
    %c0_i32_10 = arith.constant 0 : i32
    %20 = vector.broadcast %c0_i32_10 : i32 to vector<16x512xi32>
    %21 = arith.cmpi ne, %19, %20 : vector<16x512xi32>
    %c0_i32_11 = arith.constant 0 : i32
    %22 = vector.broadcast %c0_i32_11 : i32 to vector<16x512xi32>
    %23 = arith.cmpi slt, %19, %22 : vector<16x512xi32>
    %c0_i32_12 = arith.constant 0 : i32
    %24 = arith.cmpi slt, %17, %c0_i32_12 : i32
    %25 = vector.broadcast %24 : i1 to vector<16x512xi1>
    %26 = vector.broadcast %25 : vector<16x512xi1> to vector<16x512xi1>
    %27 = arith.xori %23, %26 : vector<16x512xi1>
    %28 = arith.andi %27, %21 : vector<16x512xi1>
    %29 = vector.broadcast %17 : i32 to vector<16x512xi32>
    %30 = arith.addi %19, %29 : vector<16x512xi32>
    %31 = arith.select %28, %30, %19 : vector<16x512xi1>, vector<16x512xi32>
    %c0_i32_13 = arith.constant 0 : i32
    %32 = vector.broadcast %c0_i32_13 : i32 to vector<16x512xi32>
    %33 = arith.cmpi sgt, %31, %32 : vector<16x512xi32>
    %c1_i32_14 = arith.constant 1 : i32
    %34 = tpu.dynamic_rotate %13 by %c1_i32_14 dim 0 : vector<16x512xf32>, i32 -> vector<16x512xf32>
    %cst_15 = arith.constant 0.000000e+00 : f32
    %35 = vector.broadcast %cst_15 : f32 to vector<16x512xf32>
    %36 = arith.select %33, %34, %35 : vector<16x512xi1>, vector<16x512xf32>
    %c15_i32 = arith.constant 15 : i32
    %37 = vector.broadcast %c15_i32 : i32 to vector<16x512xi32>
    %38 = arith.cmpi slt, %31, %37 : vector<16x512xi32>
    %c15_i32_16 = arith.constant 15 : i32
    %39 = tpu.dynamic_rotate %13 by %c15_i32_16 dim 0 : vector<16x512xf32>, i32 -> vector<16x512xf32>
    %cst_17 = arith.constant 0.000000e+00 : f32
    %40 = vector.broadcast %cst_17 : f32 to vector<16x512xf32>
    %41 = arith.select %38, %39, %40 : vector<16x512xi1>, vector<16x512xf32>
    %c32_i32 = arith.constant 32 : i32
    %42 = tpu.dynamic_rotate %36 by %c32_i32 dim 1 : vector<16x512xf32>, i32 -> vector<16x512xf32>
    %c480_i32 = arith.constant 480 : i32
    %43 = tpu.dynamic_rotate %36 by %c480_i32 dim 1 : vector<16x512xf32>, i32 -> vector<16x512xf32>
    %44 = vector.extract_strided_slice %14 {offsets = [0, 0], sizes = [1, 512], strides = [1, 1]} : vector<9x512xf32> to vector<1x512xf32>
    %45 = vector.broadcast %44 : vector<1x512xf32> to vector<16x512xf32>
    %46 = arith.mulf %42, %45 : vector<16x512xf32>
    %47 = vector.extract_strided_slice %14 {offsets = [1, 0], sizes = [1, 512], strides = [1, 1]} : vector<9x512xf32> to vector<1x512xf32>
    %48 = vector.broadcast %47 : vector<1x512xf32> to vector<16x512xf32>
    %49 = arith.mulf %36, %48 : vector<16x512xf32>
    %50 = arith.addf %46, %49 : vector<16x512xf32>
    %51 = vector.extract_strided_slice %14 {offsets = [2, 0], sizes = [1, 512], strides = [1, 1]} : vector<9x512xf32> to vector<1x512xf32>
    %52 = vector.broadcast %51 : vector<1x512xf32> to vector<16x512xf32>
    %53 = arith.mulf %43, %52 : vector<16x512xf32>
    %54 = arith.addf %50, %53 : vector<16x512xf32>
    %c32_i32_18 = arith.constant 32 : i32
    %55 = tpu.dynamic_rotate %13 by %c32_i32_18 dim 1 : vector<16x512xf32>, i32 -> vector<16x512xf32>
    %c480_i32_19 = arith.constant 480 : i32
    %56 = tpu.dynamic_rotate %13 by %c480_i32_19 dim 1 : vector<16x512xf32>, i32 -> vector<16x512xf32>
    %57 = vector.extract_strided_slice %14 {offsets = [3, 0], sizes = [1, 512], strides = [1, 1]} : vector<9x512xf32> to vector<1x512xf32>
    %58 = vector.broadcast %57 : vector<1x512xf32> to vector<16x512xf32>
    %59 = arith.mulf %55, %58 : vector<16x512xf32>
    %60 = vector.extract_strided_slice %14 {offsets = [4, 0], sizes = [1, 512], strides = [1, 1]} : vector<9x512xf32> to vector<1x512xf32>
    %61 = vector.broadcast %60 : vector<1x512xf32> to vector<16x512xf32>
    %62 = arith.mulf %13, %61 : vector<16x512xf32>
    %63 = arith.addf %59, %62 : vector<16x512xf32>
    %64 = vector.extract_strided_slice %14 {offsets = [5, 0], sizes = [1, 512], strides = [1, 1]} : vector<9x512xf32> to vector<1x512xf32>
    %65 = vector.broadcast %64 : vector<1x512xf32> to vector<16x512xf32>
    %66 = arith.mulf %56, %65 : vector<16x512xf32>
    %67 = arith.addf %63, %66 : vector<16x512xf32>
    %68 = arith.addf %54, %67 : vector<16x512xf32>
    %c32_i32_20 = arith.constant 32 : i32
    %69 = tpu.dynamic_rotate %41 by %c32_i32_20 dim 1 : vector<16x512xf32>, i32 -> vector<16x512xf32>
    %c480_i32_21 = arith.constant 480 : i32
    %70 = tpu.dynamic_rotate %41 by %c480_i32_21 dim 1 : vector<16x512xf32>, i32 -> vector<16x512xf32>
    %71 = vector.extract_strided_slice %14 {offsets = [6, 0], sizes = [1, 512], strides = [1, 1]} : vector<9x512xf32> to vector<1x512xf32>
    %72 = vector.broadcast %71 : vector<1x512xf32> to vector<16x512xf32>
    %73 = arith.mulf %69, %72 : vector<16x512xf32>
    %74 = vector.extract_strided_slice %14 {offsets = [7, 0], sizes = [1, 512], strides = [1, 1]} : vector<9x512xf32> to vector<1x512xf32>
    %75 = vector.broadcast %74 : vector<1x512xf32> to vector<16x512xf32>
    %76 = arith.mulf %41, %75 : vector<16x512xf32>
    %77 = arith.addf %73, %76 : vector<16x512xf32>
    %78 = vector.extract_strided_slice %14 {offsets = [8, 0], sizes = [1, 512], strides = [1, 1]} : vector<9x512xf32> to vector<1x512xf32>
    %79 = vector.broadcast %78 : vector<1x512xf32> to vector<16x512xf32>
    %80 = arith.mulf %70, %79 : vector<16x512xf32>
    %81 = arith.addf %77, %80 : vector<16x512xf32>
    %82 = arith.addf %68, %81 : vector<16x512xf32>
    %c0_22 = arith.constant 0 : index
    %c0_23 = arith.constant 0 : index
    %83 = vector.load %arg5[%c0_22, %c0_23] : memref<1x512xf32, #tpu.memory_space<vmem>>, vector<1x512xf32>
    %84 = vector.broadcast %83 : vector<1x512xf32> to vector<16x512xf32>
    %85 = arith.addf %82, %84 : vector<16x512xf32>
    %cst_24 = arith.constant 5.000000e-01 : f32
    %86 = vector.broadcast %cst_24 : f32 to vector<16x512xf32>
    %87 = arith.mulf %86, %85 : vector<16x512xf32>
    %cst_25 = arith.constant 0.707106769 : f32
    %88 = vector.broadcast %cst_25 : f32 to vector<16x512xf32>
    %89 = arith.mulf %85, %88 : vector<16x512xf32>
    %90 = math.erf %89 : vector<16x512xf32>
    %cst_26 = arith.constant 1.000000e+00 : f32
    %91 = vector.broadcast %cst_26 : f32 to vector<16x512xf32>
    %92 = arith.addf %91, %90 : vector<16x512xf32>
    %93 = arith.mulf %87, %92 : vector<16x512xf32>
    %94 = arith.addf %13, %93 : vector<16x512xf32>
    %c0_27 = arith.constant 0 : index
    %c0_28 = arith.constant 0 : index
    %95 = vector.load %arg6[%c0_27, %c0_28] : memref<16x512xf32, #tpu.memory_space<vmem>>, vector<16x512xf32>
    tpu.vector_store %arg6[%c0_27, %c0_28], %94 {strides = array<i32>} : memref<16x512xf32, #tpu.memory_space<vmem>>, vector<16x512xf32>,
    return
  }
  func.func @transform_0(%arg0: i32) -> (i32, i32) {
    %c0_i32 = arith.constant 0 : i32
    %c0_i32_0 = arith.constant 0 : i32
    return %arg0, %c0_i32 : i32, i32
  }
  func.func @transform_1(%arg0: i32) -> (i32, i32) {
    %c0_i32 = arith.constant 0 : i32
    %c0_i32_0 = arith.constant 0 : i32
    %c0_i32_1 = arith.constant 0 : i32
    return %c0_i32, %c0_i32_0 : i32, i32
  }
  func.func @transform_2(%arg0: i32) -> (i32, i32) {
    %c0_i32 = arith.constant 0 : i32
    %c0_i32_0 = arith.constant 0 : i32
    %c0_i32_1 = arith.constant 0 : i32
    return %c0_i32, %c0_i32_0 : i32, i32
  }
  func.func @transform_3(%arg0: i32) -> (i32, i32) {
    %c0_i32 = arith.constant 0 : i32
    %c0_i32_0 = arith.constant 0 : i32
    %c0_i32_1 = arith.constant 0 : i32
    return %c0_i32, %c0_i32_0 : i32, i32
  }
  func.func @transform_4(%arg0: i32) -> (i32, i32) {
    %c0_i32 = arith.constant 0 : i32
    %c0_i32_0 = arith.constant 0 : i32
    %c0_i32_1 = arith.constant 0 : i32
    return %c0_i32, %c0_i32_0 : i32, i32
  }
  func.func @transform_5(%arg0: i32) -> (i32, i32) {
    %c0_i32 = arith.constant 0 : i32
    %c0_i32_0 = arith.constant 0 : i32
    return %arg0, %c0_i32 : i32, i32
  }
}

</mosaic_0001>

<bundles_post_ra>
// kernel: tpu_custom_call.1
= control target key start
LH: loop header
LB: loop body
LE: loop exit
PB: predicated region body
PF: predicated region fallthrough
CT: control target
= control target key end

     0   :  { %10 = vsyncpa [#allocation3], 0  ;;  %s4029_s0 = inlined_call_operand.hbm [shape: f32[32,512], index: 0, kind: input, shape index: {}]   ;;  %s4030_s1 = inlined_call_operand.hbm [shape: f32[512,512], index: 1, kind: input, shape index: {}]   ;;  %s4031_s2 = inlined_call_operand.hbm [shape: f32[1,512], index: 2, kind: input, shape index: {}]   ;;  %s4032_s3 = inlined_call_operand.hbm [shape: f32[9,512], index: 3, kind: input, shape index: {}]   ;;  %s4033_s4 = inlined_call_operand.hbm [shape: f32[1,512], index: 4, kind: input, shape index: {}]   ;;  %s4034_s5 = inlined_call_operand.hbm [shape: f32[32,512], index: 5, kind: output, shape index: {}]  }
   0x1   :  { %12 = vsyncpa [#allocation3 + $0x1], 0 }
   0x2   :  { %13 = vsyncpa [#allocation6], 0 }
   0x3   :  { %14 = vsyncpa [#allocation9], 0 }
   0x4   :  { %15 = vsyncpa [#allocation4], 0 }
   0x5   :  { %17 = vsyncpa [#allocation4 + $0x1], 0  ;;  %s2664_s18 = smov 0   ;;  %s2666_s19 = smov 0  }
   0x6   :  { %s2668_s20 = smov 0   ;;  %s2670_s21 = smov 0  }
   0x7 LB: > { %s2685_s22 = sadd.s32 4294967295, %s2623_s21   ;;  %s2227_s23 = sadd.s32 4294967294, %s2623_s21   ;;  %s2623_s21 = sphi %s2670_s21, %s4154_s21   ;;  %s2619_s20 = sphi %s2668_s20, %s4153_s20   ;;  %s2615_s19 = sphi %s2666_s19, %s4152_s19   ;;  %s2611_s18 = sphi %s2664_s18, %s4151_s18  }
   0x8   : > { %p43_p0 = scmp.ne.s32.totalorder %s2615_s19, %s2611_s18  ;;  %p44_p1 = scmp.eq.s32.totalorder %s2685_s22, 0 }
   0x9   : > { %p151_p2 = scmp.eq.s32.totalorder %s2685_s22, 1  ;;  %p157_p3 = scmp.eq.s32.totalorder %s2227_s23, 1 }
   0xa   : > { %p2694_p4 = por %p44_p1, %p43_p0  ;;  %p2228_p5 = scmp.ge.s32.totalorder %s2623_s21, 1 }
   0xb   : > { %p2699_p6 = por %p157_p3, %p43_p0  ;;  %p164_p7 = scmp.lt.s32.totalorder %s2623_s21, 3 }
   0xc   : > { %s175_s28 = sshll.u32 %s4030_s1, 4  ;;  %s2625_s30 = smov [#allocation5]   ;;  %s176_s28 = int_to_ptr.hbm [resolvable:$true] %s175_s28 }
   0xd   : > { %p2707_p8 = pnand %p2228_p5, %p164_p7  ;;  %s177_s6 = sshll.u32 %s2625_s30, 4  ;;  %s178_s6 = int_to_ptr.vmem [resolvable:$true] %s177_s6 }
   0xe   : > { %s201_s10 = sshll.u32 %s4032_s3, 4  ;;  %s4035_s11 = smov 512   ;;  %s202_s10 = int_to_ptr.hbm [resolvable:$true] %s201_s10 }
   0xf   : > { %p2291_p9 = pneg %p2707_p8  ;;  %s2627_s12 = smov 32  }
  0x10   : > { %s2628_s13 = smov [#allocation8]   ;;  %s190_s17 = sshll.u32 %s4031_s2, 4  ;;  %s191_s17 = int_to_ptr.hbm [resolvable:$true] %s190_s17 }
  0x11   : > { %p2715_p10 = pnand %p2291_p9, %p44_p1  ;;  %s203_s14 = sshll.u32 %s2628_s13, 4  ;;  %s204_s14 = int_to_ptr.vmem [resolvable:$true] %s203_s14 }
  0x12   : > { %s216_s27 = sshll.u32 %s4033_s4, 4  ;;  %s2744_s9 = sadd.s32 1, %s2623_s21   ;;  %s217_s27 = int_to_ptr.hbm [resolvable:$true] %s216_s27 }
  0x13   : > { %2294 = dma.hbm_to_vmem [thread:$0]  (!%p2715_p10), %s176_s28, 32768, %s178_s6, [#allocation6], %s4035_s11, %s4035_s11, %s2627_s12  }
  0x14   : > { %2300 = dma.hbm_to_vmem [thread:$0]  (!%p2715_p10), %s202_s10, 1024, %s204_s14, [#allocation9], %s4035_s11, %s4035_s11, %s2627_s12  }
  0x15   : > { %s2629_s28 = smov [#allocation7]   ;;  %s2630_s6 = smov [#allocation10]  }
  0x16   : > { %s192_s30 = sshll.u32 %s2629_s28, 4  ;;  %s218_s8 = sshll.u32 %s2630_s6, 4  ;;  %s193_s30 = int_to_ptr.vmem [resolvable:$true] %s192_s30  ;;  %s219_s8 = int_to_ptr.vmem [resolvable:$true] %s218_s8 }
  0x17   : > { %2297 = dma.hbm_to_vmem [thread:$0]  (!%p2715_p10), %s191_s17, 64, %s193_s30, [#allocation6]  }
  0x18   : > { %2303 = dma.hbm_to_vmem [thread:$0]  (!%p2715_p10), %s217_s27, 64, %s219_s8, [#allocation9]  }
  0x19   : > { %s30_s10 = sadd.s32 1, %s2619_s20  ;;  %s27_s13 = ssub.s32 %s2623_s21, %s2744_s9 }
  0x1a   : > { %p37_p12 = scmp.ne.s32.totalorder %s2619_s20, %s2615_s19  ;;  %p28_p13 = scmp.eq.s32.totalorder %s27_s13, 0 }
  0x1b   : > { %p38_p0 = scmp.eq.s32.totalorder %s2623_s21, 0  ;;  %p2316_p5 = scmp.lt.s32.totalorder %s2623_s21, 2 }
  0x1c   : > { %p2754_p3 = por %p151_p2, %p37_p12  ;;  %s229_s16 = sand.u32 1, %s2619_s20  }
  0x1d   : > { %s2760_s15 = scalar_select %p28_p13, %s2619_s20, %s30_s10  }
  0x1e   : > { %p39_p7 = por %p38_p0, %p37_p12  ;;  %s2234_s7 = sshll.u32 %s229_s16, 6 }
  0x1f   : > { %s2268_s17 = sshll.u32 %s2623_s21, 6  ;;  %s233_s28 = scalar_lea.vmem [#allocation2], %s2234_s7 }
  0x20   : > { %s239_s27 = scalar_lea.hbm %s4029_s0, %s2268_s17  ;;  %s242_s30 = sshll.u32 %s233_s28, 4  ;;  %s243_s30 = int_to_ptr.vmem [resolvable:$true] %s242_s30 }
  0x21   : > { %s240_s6 = sshll.u32 %s239_s27, 4  ;;  %p2767_p2 = pnand %p2316_p5, %p39_p7  ;;  %s241_s6 = int_to_ptr.hbm [resolvable:$true] %s240_s6 }
  0x22   : > { %s230_s10 = scalar_lea.sflag [#allocation3], %s229_s16  ;;  %s2519_s13 = sshra.s32 %s241_s6, 4  ;;  %s2520_s13 = int_to_ptr.hbm [resolvable:$true] %s2519_s13 }
  0x23   : > { %s2521_s11 = scalar_lea.hbm %s2520_s13, 64  ;;  %p2523_p10 = pneg %p2767_p2 }
  0x24   : > { %p2522_p9 = scmp.ne.s32.totalorder %s2520_s13, %s2521_s11  ;;  %s2526_s23 = scalar_lea.hbm %s4029_s0, 128 }
  0x25   : > { %p2527_p0 = scmp.lt.s32.totalorder %s2520_s13, %s4029_s0  ;;  %p2528_p5 = scmp.lt.s32.totalorder %s2526_s23, %s2521_s11 }
  0x26   : > { %p2524_p12 = pnand %p2523_p10, %p2522_p9 }
  0x27   : > { %p2529_p7 = por %p2528_p5, %p2527_p0 }
  0x28   : > { %p2525_p13 = pneg %p2524_p12 }
  0x2a   : > { %p2530_p11 = pnand %p2529_p7, %p2525_p13 }
  0x2c   : > { %2533 = shalt.err (!%p2530_p11)
}
  0x2d   : > { %s4071_s16 = smov 512   ;;  %254 = sbr.rel (%p2707_p8) target bundleno = 673 (0x2a1), region = 40 }
  0x2e   : > { %2307 = dma.hbm_to_vmem [thread:$0]  (!%p2767_p2), %s241_s6, 1024, %s243_s30, %s230_s10, %s4071_s16, %s4071_s16, %s2627_s12  }
  0x32   : > { %s2787_s28 = sand.u32 1, %s2615_s19  }
  0x33   : > { %s2239_s11 = sshll.u32 %s2787_s28, 6  ;;  %s257_s13 = scalar_lea.sflag [#allocation3], %s2787_s28 }
  0x34   : > { %s2793_s17 = scalar_lea.vmem [#allocation2], %s2239_s11 }
  0x35   : > { %2594 = dma.done.wait (%p2694_p4), %s257_s13, 1024  }
  0x36   : > { %2596 = vsyncadd (%p2694_p4), %s257_s13, 4294966272 }
  0x37   : > { %2598 = dma.done.wait (%p44_p1), [#allocation6], 32832  }
  0x38   : > { %2600 = vsyncadd (%p44_p1), [#allocation6], 4294934464 }
  0x39   : > { %2602 = dma.done.wait (%p44_p1), [#allocation9], 1088  }
  0x3a   : > { %2604 = vsyncadd (%p44_p1), [#allocation9], 4294966208  ;;  %v506_v0 = vld [vmem:[#allocation5 + $0x5e0] sm:$0xff]  ;;  %v2808_v62 = vld [vmem:[%s2793_s17 + $0x10] sm:$0xff]  ;;  %s2631_s24 = smov 96   ;;  %s2632_s29 = smov 32  }
  0x3b   : > { %v378_v1 = vld [vmem:[#allocation5 + $0x1e0] sm:$0xff]  ;;  %630 = vmatpush.msra.mxu2 %v506_v0  ;;  %v507_v0 = vld [vmem:[#allocation5 + $0x5e8] sm:$0xff]  ;;  %s3853_s12 = scalar_lea.vmem [#allocation11], %s2239_s11  ;;  %s2270_s30 = sshll.u32 %s2685_s22, 6 }
  0x3c   : > { %v502_v2 = vld [vmem:[#allocation5 + $0x5c0] sm:$0xff]  ;;  %584 = vmatpush.msra.mxu0 %v378_v1  ;;  %s2112_s10 = scalar_lea.hbm %s4034_s5, %s2270_s30  ;;  %s2113_s7 = sshll.u32 %s3853_s12, 4  ;;  %s2114_s7 = int_to_ptr.vmem [resolvable:$true] %s2113_s7 }
  0x3d   : > { %v570_v3 = vld [vmem:[#allocation5 + $0x7e0] sm:$0xff]  ;;  %631 = vmatpush.msra.mxu2 %v502_v2  ;;  %v2814_v2 = vld [vmem:[%s2793_s17 + $0x18] sm:$0xff]  ;;  %s2115_s23 = sshll.u32 %s2112_s10, 4  ;;  %s2100_s22 = scalar_lea.sflag [#allocation4], %s2787_s28  ;;  %s2116_s23 = int_to_ptr.hbm [resolvable:$true] %s2115_s23 }
  0x3e   : > { %v374_v4 = vld [vmem:[#allocation5 + $0x1c0] sm:$0xff]  ;;  %653 = vmatpush.msra.mxu3 %v570_v3  ;;  %v379_v3 = vld [vmem:[#allocation5 + $0x1e8] sm:$0xff]  ;;  %s2563_s26 = sshra.s32 %s2116_s23, 4  ;;  %s2569_s13 = scalar_lea.hbm %s4034_s5, 128  ;;  %s2564_s26 = int_to_ptr.hbm [resolvable:$true] %s2563_s26 }
  0x3f   : > { %v442_v5 = vld [vmem:[#allocation5 + $0x3e0] sm:$0xff]  ;;  %585 = vmatpush.msra.mxu0 %v374_v4  ;;  %v503_v4 = vld [vmem:[#allocation5 + $0x5c8] sm:$0xff]  ;;  %s2565_s27 = scalar_lea.hbm %s2564_s26, 64  ;;  %p2570_p11 = scmp.lt.s32.totalorder %s2564_s26, %s4034_s5 }
  0x40   : > { %607 = vmatpush.msra.mxu1 %v442_v5  ;;  %v498_v6 = vld [vmem:[#allocation5 + $0x5a0] sm:$0xff]  ;;  %v571_v5 = vld [vmem:[#allocation5 + $0x7e8] sm:$0xff]  ;;  %p2566_p1 = scmp.ne.s32.totalorder %s2564_s26, %s2565_s27  ;;  %p2571_p2 = scmp.lt.s32.totalorder %s2569_s13, %s2565_s27 }
  0x41   : > { %v566_v7 = vld [vmem:[#allocation5 + $0x7c0] sm:$0xff]  ;;  %632 = vmatpush.msra.mxu2 %v498_v6 }
  0x42   : > { %v370_v8 = vld [vmem:[#allocation5 + $0x1a0] sm:$0xff]  ;;  %654 = vmatpush.msra.mxu3 %v566_v7  ;;  %v375_v7 = vld [vmem:[#allocation5 + $0x1c8] sm:$0xff]  ;;  %p2567_p4 = pnand %p2566_p1, %p2754_p3  ;;  %p2572_p9 = por %p2571_p2, %p2570_p11 }
  0x43   : > { %v438_v9 = vld [vmem:[#allocation5 + $0x3c0] sm:$0xff]  ;;  %586 = vmatpush.msra.mxu0 %v370_v8  ;;  %v2820_v8 = vld [vmem:[%s2793_s17 + $0x8] sm:$0xff] }
  0x44   : > { %v562_v10 = vld [vmem:[#allocation5 + $0x7a0] sm:$0xff]  ;;  %608 = vmatpush.msra.mxu1 %v438_v9  ;;  %v499_v9 = vld [vmem:[#allocation5 + $0x5a8] sm:$0xff]  ;;  %p2568_p8 = pneg %p2567_p4 }
  0x45   : > { %v494_v11 = vld [vmem:[#allocation5 + $0x580] sm:$0xff]  ;;  %655 = vmatpush.msra.mxu3 %v562_v10  ;;  %v443_v10 = vld [vmem:[#allocation5 + $0x3e8] sm:$0xff] }
  0x46   : > { %v366_v12 = vld [vmem:[#allocation5 + $0x180] sm:$0xff]  ;;  %633 = vmatpush.msra.mxu2 %v494_v11  ;;  %v567_v11 = vld [vmem:[#allocation5 + $0x7c8] sm:$0xff]  ;;  %p2573_p10 = pnand %p2572_p9, %p2568_p8 }
  0x47   : > { %v434_v13 = vld [vmem:[#allocation5 + $0x3a0] sm:$0xff]  ;;  %587 = vmatpush.msra.mxu0 %v366_v12  ;;  %v371_v12 = vld [vmem:[#allocation5 + $0x1a8] sm:$0xff] }
  0x48   : > { %v558_v14 = vld [vmem:[#allocation5 + $0x780] sm:$0xff]  ;;  %609 = vmatpush.msra.mxu1 %v434_v13  ;;  %v495_v13 = vld [vmem:[#allocation5 + $0x588] sm:$0xff] }
  0x49   : > { %v430_v15 = vld [vmem:[#allocation5 + $0x380] sm:$0xff]  ;;  %656 = vmatpush.msra.mxu3 %v558_v14  ;;  %v439_v14 = vld [vmem:[#allocation5 + $0x3c8] sm:$0xff] }
  0x4a   : > { %v490_v16 = vld [vmem:[#allocation5 + $0x560] sm:$0xff]  ;;  %610 = vmatpush.msra.mxu1 %v430_v15  ;;  %v563_v15 = vld [vmem:[#allocation5 + $0x7a8] sm:$0xff] }
  0x4b   : > { %v362_v17 = vld [vmem:[#allocation5 + $0x160] sm:$0xff]  ;;  %634 = vmatpush.msra.mxu2 %v490_v16  ;;  %v2824_v16 = vld [vmem:[%s2793_s17 + $0x30] sm:$0xff] }
  0x4c   : > { %v554_v18 = vld [vmem:[#allocation5 + $0x760] sm:$0xff]  ;;  %588 = vmatpush.msra.mxu0 %v362_v17  ;;  %v367_v17 = vld [vmem:[#allocation5 + $0x188] sm:$0xff] }
  0x4d   : > { %v426_v19 = vld [vmem:[#allocation5 + $0x360] sm:$0xff]  ;;  %657 = vmatpush.msra.mxu3 %v554_v18  ;;  %v435_v18 = vld [vmem:[#allocation5 + $0x3a8] sm:$0xff] }
  0x4e   : > { %v486_v20 = vld [vmem:[#allocation5 + $0x540] sm:$0xff]  ;;  %611 = vmatpush.msra.mxu1 %v426_v19  ;;  %v491_v19 = vld [vmem:[#allocation5 + $0x568] sm:$0xff] }
  0x4f   : > { %v358_v21 = vld [vmem:[#allocation5 + $0x140] sm:$0xff]  ;;  %635 = vmatpush.msra.mxu2 %v486_v20  ;;  %v559_v20 = vld [vmem:[#allocation5 + $0x788] sm:$0xff] }
  0x50   : > { %v550_v22 = vld [vmem:[#allocation5 + $0x740] sm:$0xff]  ;;  %589 = vmatpush.msra.mxu0 %v358_v21 }
  0x51   : > { %v422_v23 = vld [vmem:[#allocation5 + $0x340] sm:$0xff]  ;;  %658 = vmatpush.msra.mxu3 %v550_v22  ;;  %v2831_v22 = vld [vmem:[%s2793_s17 + $0x38] sm:$0xff] }
  0x52   : > { %v482_v24 = vld [vmem:[#allocation5 + $0x520] sm:$0xff]  ;;  %612 = vmatpush.msra.mxu1 %v422_v23  ;;  %v363_v23 = vld [vmem:[#allocation5 + $0x168] sm:$0xff] }
  0x53   : > { %v354_v25 = vld [vmem:[#allocation5 + $0x120] sm:$0xff]  ;;  %636 = vmatpush.msra.mxu2 %v482_v24  ;;  %v431_v24 = vld [vmem:[#allocation5 + $0x388] sm:$0xff] }
  0x54   : > { %v546_v26 = vld [vmem:[#allocation5 + $0x720] sm:$0xff]  ;;  %590 = vmatpush.msra.mxu0 %v354_v25  ;;  %v487_v25 = vld [vmem:[#allocation5 + $0x548] sm:$0xff] }
  0x55   : > { %v418_v27 = vld [vmem:[#allocation5 + $0x320] sm:$0xff]  ;;  %659 = vmatpush.msra.mxu3 %v546_v26  ;;  %v555_v26 = vld [vmem:[#allocation5 + $0x768] sm:$0xff] }
  0x56   : > { %v478_v28 = vld [vmem:[#allocation5 + $0x500] sm:$0xff]  ;;  %613 = vmatpush.msra.mxu1 %v418_v27  ;;  %v2835_v27 = vld [vmem:[%s2793_s17 + $0x28] sm:$0xff] }
  0x57   : > { %v350_v29 = vld [vmem:[#allocation5 + $0x100] sm:$0xff]  ;;  %637 = vmatpush.msra.mxu2 %v478_v28  ;;  %v359_v28 = vld [vmem:[#allocation5 + $0x148] sm:$0xff] }
  0x58   : > { %v542_v30 = vld [vmem:[#allocation5 + $0x700] sm:$0xff]  ;;  %591 = vmatpush.msra.mxu0 %v350_v29  ;;  %v427_v29 = vld [vmem:[#allocation5 + $0x368] sm:$0xff] }
  0x59   : > { %v414_v31 = vld [vmem:[#allocation5 + $0x300] sm:$0xff]  ;;  %660 = vmatpush.msra.mxu3 %v542_v30  ;;  %v483_v30 = vld [vmem:[#allocation5 + $0x528] sm:$0xff] }
  0x5a   : > { %v474_v32 = vld [vmem:[#allocation5 + $0x4e0] sm:$0xff]  ;;  %614 = vmatpush.msra.mxu1 %v414_v31  ;;  %v551_v31 = vld [vmem:[#allocation5 + $0x748] sm:$0xff] }
  0x5b   : > { %v346_v33 = vld [vmem:[#allocation5 + $0xe0] sm:$0xff]  ;;  %638 = vmatpush.msra.mxu2 %v474_v32  ;;  %v355_v32 = vld [vmem:[#allocation5 + $0x128] sm:$0xff] }
  0x5c   : > { %v538_v34 = vld [vmem:[#allocation5 + $0x6e0] sm:$0xff]  ;;  %592 = vmatpush.msra.mxu0 %v346_v33  ;;  %v423_v33 = vld [vmem:[#allocation5 + $0x348] sm:$0xff] }
  0x5d   : > { %v410_v35 = vld [vmem:[#allocation5 + $0x2e0] sm:$0xff]  ;;  %661 = vmatpush.msra.mxu3 %v538_v34  ;;  %v479_v34 = vld [vmem:[#allocation5 + $0x508] sm:$0xff] }
  0x5e   : > { %v470_v36 = vld [vmem:[#allocation5 + $0x4c0] sm:$0xff]  ;;  %615 = vmatpush.msra.mxu1 %v410_v35  ;;  %v547_v35 = vld [vmem:[#allocation5 + $0x728] sm:$0xff] }
  0x5f   : > { %v342_v37 = vld [vmem:[#allocation5 + $0xc0] sm:$0xff]  ;;  %639 = vmatpush.msra.mxu2 %v470_v36  ;;  %v351_v36 = vld [vmem:[#allocation5 + $0x108] sm:$0xff] }
  0x60   : > { %v534_v38 = vld [vmem:[#allocation5 + $0x6c0] sm:$0xff]  ;;  %593 = vmatpush.msra.mxu0 %v342_v37  ;;  %v419_v37 = vld [vmem:[#allocation5 + $0x328] sm:$0xff] }
  0x61   : > { %v406_v39 = vld [vmem:[#allocation5 + $0x2c0] sm:$0xff]  ;;  %662 = vmatpush.msra.mxu3 %v534_v38  ;;  %v475_v38 = vld [vmem:[#allocation5 + $0x4e8] sm:$0xff] }
  0x62   : > { %v466_v40 = vld [vmem:[#allocation5 + $0x4a0] sm:$0xff]  ;;  %616 = vmatpush.msra.mxu1 %v406_v39  ;;  %v543_v39 = vld [vmem:[#allocation5 + $0x708] sm:$0xff] }
  0x63   : > { %v338_v41 = vld [vmem:[#allocation5 + $0xa0] sm:$0xff]  ;;  %640 = vmatpush.msra.mxu2 %v466_v40  ;;  %v347_v40 = vld [vmem:[#allocation5 + $0xe8] sm:$0xff] }
  0x64   : > { %v530_v42 = vld [vmem:[#allocation5 + $0x6a0] sm:$0xff]  ;;  %594 = vmatpush.msra.mxu0 %v338_v41  ;;  %v415_v41 = vld [vmem:[#allocation5 + $0x308] sm:$0xff] }
  0x65   : > { %v402_v43 = vld [vmem:[#allocation5 + $0x2a0] sm:$0xff]  ;;  %663 = vmatpush.msra.mxu3 %v530_v42  ;;  %v471_v42 = vld [vmem:[#allocation5 + $0x4c8] sm:$0xff] }
  0x66   : > { %v462_v44 = vld [vmem:[#allocation5 + $0x480] sm:$0xff]  ;;  %617 = vmatpush.msra.mxu1 %v402_v43  ;;  %v539_v43 = vld [vmem:[#allocation5 + $0x6e8] sm:$0xff] }
  0x67   : > { %v334_v45 = vld [vmem:[#allocation5 + $0x80] sm:$0xff]  ;;  %641 = vmatpush.msra.mxu2 %v462_v44  ;;  %v343_v44 = vld [vmem:[#allocation5 + $0xc8] sm:$0xff] }
  0x68   : > { %v526_v46 = vld [vmem:[#allocation5 + $0x680] sm:$0xff]  ;;  %595 = vmatpush.msra.mxu0 %v334_v45  ;;  %v411_v45 = vld [vmem:[#allocation5 + $0x2e8] sm:$0xff] }
  0x69   : > { %v398_v47 = vld [vmem:[#allocation5 + $0x280] sm:$0xff]  ;;  %664 = vmatpush.msra.mxu3 %v526_v46  ;;  %v467_v46 = vld [vmem:[#allocation5 + $0x4a8] sm:$0xff] }
  0x6a   : > { %v458_v48 = vld [vmem:[#allocation5 + $0x460] sm:$0xff]  ;;  %618 = vmatpush.msra.mxu1 %v398_v47  ;;  %v535_v47 = vld [vmem:[#allocation5 + $0x6c8] sm:$0xff] }
  0x6b   : > { %v330_v49 = vld [vmem:[#allocation5 + $0x60] sm:$0xff]  ;;  %642 = vmatpush.msra.mxu2 %v458_v48  ;;  %v339_v48 = vld [vmem:[#allocation5 + $0xa8] sm:$0xff] }
  0x6c   : > { %v522_v50 = vld [vmem:[#allocation5 + $0x660] sm:$0xff]  ;;  %596 = vmatpush.msra.mxu0 %v330_v49  ;;  %v407_v49 = vld [vmem:[#allocation5 + $0x2c8] sm:$0xff] }
  0x6d   : > { %v394_v51 = vld [vmem:[#allocation5 + $0x260] sm:$0xff]  ;;  %665 = vmatpush.msra.mxu3 %v522_v50  ;;  %v463_v50 = vld [vmem:[#allocation5 + $0x488] sm:$0xff] }
  0x6e   : > { %v454_v52 = vld [vmem:[#allocation5 + $0x440] sm:$0xff]  ;;  %619 = vmatpush.msra.mxu1 %v394_v51  ;;  %v531_v51 = vld [vmem:[#allocation5 + $0x6a8] sm:$0xff] }
  0x6f   : > { %v326_v53 = vld [vmem:[#allocation5 + $0x40] sm:$0xff]  ;;  %643 = vmatpush.msra.mxu2 %v454_v52  ;;  %v335_v52 = vld [vmem:[#allocation5 + $0x88] sm:$0xff] }
  0x70   : > { %v518_v54 = vld [vmem:[#allocation5 + $0x640] sm:$0xff]  ;;  %597 = vmatpush.msra.mxu0 %v326_v53  ;;  %v403_v53 = vld [vmem:[#allocation5 + $0x2a8] sm:$0xff] }
  0x71   : > { %v390_v55 = vld [vmem:[#allocation5 + $0x240] sm:$0xff]  ;;  %666 = vmatpush.msra.mxu3 %v518_v54  ;;  %v459_v54 = vld [vmem:[#allocation5 + $0x468] sm:$0xff] }
  0x72   : > { %v450_v56 = vld [vmem:[#allocation5 + $0x420] sm:$0xff]  ;;  %620 = vmatpush.msra.mxu1 %v390_v55  ;;  %v527_v55 = vld [vmem:[#allocation5 + $0x688] sm:$0xff] }
  0x73   : > { %v322_v57 = vld [vmem:[#allocation5 + $0x20] sm:$0xff]  ;;  %644 = vmatpush.msra.mxu2 %v450_v56  ;;  %v331_v56 = vld [vmem:[#allocation5 + $0x68] sm:$0xff] }
  0x74   : > { %v514_v58 = vld [vmem:[#allocation5 + $0x620] sm:$0xff]  ;;  %598 = vmatpush.msra.mxu0 %v322_v57  ;;  %v399_v57 = vld [vmem:[#allocation5 + $0x288] sm:$0xff] }
  0x75   : > { %v386_v59 = vld [vmem:[#allocation5 + $0x220] sm:$0xff]  ;;  %667 = vmatpush.msra.mxu3 %v514_v58  ;;  %v455_v58 = vld [vmem:[#allocation5 + $0x448] sm:$0xff] }
  0x76   : > { %v446_v60 = vld [vmem:[#allocation5 + $0x400] sm:$0xff]  ;;  %621 = vmatpush.msra.mxu1 %v386_v59  ;;  %v523_v59 = vld [vmem:[#allocation5 + $0x668] sm:$0xff] }
  0x77   : > { %v318_v61 = vld [vmem:[#allocation5] sm:$0xff]  ;;  %645 = vmatpush.msra.mxu2 %v446_v60  ;;  %v327_v60 = vld [vmem:[#allocation5 + $0x48] sm:$0xff] }
  0x78   : > { %v510_v63 = vld [vmem:[#allocation5 + $0x600] sm:$0xff]  ;;  %599 = vmatpush.msra.mxu0 %v318_v61  ;;  %646 = vmatmul.f32.vlgmr.msra.gmra.mxu2 %v2808_v62  ;;  %v395_v61 = vld [vmem:[#allocation5 + $0x268] sm:$0xff] }
  0x79   : > { %v2811_v1 = vld [vmem:[%s2793_s17] sm:$0xff]  ;;  %668 = vmatpush.msra.mxu3 %v510_v63  ;;  %722 = vmatpush.msrb.mxu2 %v507_v0  ;;  %v451_v63 = vld [vmem:[#allocation5 + $0x428] sm:$0xff] }
  0x7a   : > { %600 = vmatmul.f32.vlgmr.msra.gmra.mxu0 %v2811_v1  ;;  %v382_v6 = vld [vmem:[#allocation5 + $0x200] sm:$0xff]  ;;  %669 = vmatmul.f32.vlgmr.msra.gmra.mxu3 %v2814_v2  ;;  %v519_v0 = vld [vmem:[#allocation5 + $0x648] sm:$0xff] }
  0x7b   : > { %676 = vmatpush.msrb.mxu0 %v379_v3  ;;  %723 = vmatpush.msrb.mxu2 %v503_v4  ;;  %v2827_v21 = vld [vmem:[%s2793_s17 + $0x20] sm:$0xff]  ;;  %v323_v3 = vld [vmem:[#allocation5 + $0x28] sm:$0xff] }
  0x7c   : > { %745 = vmatpush.msrb.mxu3 %v571_v5  ;;  %622 = vmatpush.msra.mxu1 %v382_v6  ;;  %v391_v4 = vld [vmem:[#allocation5 + $0x248] sm:$0xff] }
  0x7d   : > { %677 = vmatpush.msrb.mxu0 %v375_v7  ;;  %623 = vmatmul.f32.vlgmr.msra.gmra.mxu1 %v2820_v8  ;;  %v447_v5 = vld [vmem:[#allocation5 + $0x408] sm:$0xff] }
  0x7e   : > { %724 = vmatpush.msrb.mxu2 %v499_v9  ;;  %699 = vmatpush.msrb.mxu1 %v443_v10  ;;  %v515_v6 = vld [vmem:[#allocation5 + $0x628] sm:$0xff]  ;;  %v508_v9 = vld [vmem:[#allocation5 + $0x5f0] sm:$0xff] }
  0x7f   : > { %746 = vmatpush.msrb.mxu3 %v567_v11  ;;  %678 = vmatpush.msrb.mxu0 %v371_v12  ;;  %v319_v7 = vld [vmem:[#allocation5 + $0x8] sm:$0xff]  ;;  %v380_v12 = vld [vmem:[#allocation5 + $0x1f0] sm:$0xff] }
  0x80   : > { %725 = vmatpush.msrb.mxu2 %v495_v13  ;;  %700 = vmatpush.msrb.mxu1 %v439_v14  ;;  %v387_v10 = vld [vmem:[#allocation5 + $0x228] sm:$0xff]  ;;  %v504_v13 = vld [vmem:[#allocation5 + $0x5d0] sm:$0xff] }
  0x81   : > { %747 = vmatpush.msrb.mxu3 %v563_v15  ;;  %649 = vmatmul.f32.gmra.mxu2 %v2824_v16  ;;  %v511_v11 = vld [vmem:[#allocation5 + $0x608] sm:$0xff]  ;;  %v572_v14 = vld [vmem:[#allocation5 + $0x7f0] sm:$0xff] }
  0x82   : > { %679 = vmatpush.msrb.mxu0 %v367_v17  ;;  %701 = vmatpush.msrb.mxu1 %v435_v18  ;;  %v383_v15 = vld [vmem:[#allocation5 + $0x208] sm:$0xff]  ;;  %v376_v17 = vld [vmem:[#allocation5 + $0x1d0] sm:$0xff] }
  0x83   : > { %726 = vmatpush.msrb.mxu2 %v491_v19  ;;  %748 = vmatpush.msrb.mxu3 %v559_v20  ;;  %v500_v18 = vld [vmem:[#allocation5 + $0x5b0] sm:$0xff] }
  0x84   : > { %603 = vmatmul.f32.gmra.mxu0 %v2827_v21  ;;  %672 = vmatmul.f32.gmra.mxu3 %v2831_v22  ;;  %v444_v19 = vld [vmem:[#allocation5 + $0x3f0] sm:$0xff] }
  0x85   : > { %680 = vmatpush.msrb.mxu0 %v363_v23  ;;  %702 = vmatpush.msrb.mxu1 %v431_v24  ;;  %v568_v20 = vld [vmem:[#allocation5 + $0x7d0] sm:$0xff] }
  0x86   : > { %727 = vmatpush.msrb.mxu2 %v487_v25  ;;  %749 = vmatpush.msrb.mxu3 %v555_v26  ;;  %v372_v23 = vld [vmem:[#allocation5 + $0x1b0] sm:$0xff] }
  0x87   : > { %626 = vmatmul.f32.gmra.mxu1 %v2835_v27  ;;  %681 = vmatpush.msrb.mxu0 %v359_v28  ;;  %v496_v24 = vld [vmem:[#allocation5 + $0x590] sm:$0xff] }
  0x88   : > { %703 = vmatpush.msrb.mxu1 %v427_v29  ;;  %728 = vmatpush.msrb.mxu2 %v483_v30  ;;  %v440_v25 = vld [vmem:[#allocation5 + $0x3d0] sm:$0xff] }
  0x89   : > { %750 = vmatpush.msrb.mxu3 %v551_v31  ;;  %682 = vmatpush.msrb.mxu0 %v355_v32  ;;  %v564_v26 = vld [vmem:[#allocation5 + $0x7b0] sm:$0xff] }
  0x8a   : > { %704 = vmatpush.msrb.mxu1 %v423_v33  ;;  %729 = vmatpush.msrb.mxu2 %v479_v34  ;;  %v368_v28 = vld [vmem:[#allocation5 + $0x190] sm:$0xff] }
  0x8b   : > { %751 = vmatpush.msrb.mxu3 %v547_v35  ;;  %683 = vmatpush.msrb.mxu0 %v351_v36  ;;  %v436_v29 = vld [vmem:[#allocation5 + $0x3b0] sm:$0xff] }
  0x8c   : > { %705 = vmatpush.msrb.mxu1 %v419_v37  ;;  %730 = vmatpush.msrb.mxu2 %v475_v38  ;;  %v492_v30 = vld [vmem:[#allocation5 + $0x570] sm:$0xff] }
  0x8d   : > { %752 = vmatpush.msrb.mxu3 %v543_v39  ;;  %684 = vmatpush.msrb.mxu0 %v347_v40  ;;  %v560_v31 = vld [vmem:[#allocation5 + $0x790] sm:$0xff] }
  0x8e   : > { %706 = vmatpush.msrb.mxu1 %v415_v41  ;;  %731 = vmatpush.msrb.mxu2 %v471_v42  ;;  %v364_v32 = vld [vmem:[#allocation5 + $0x170] sm:$0xff] }
  0x8f   : > { %753 = vmatpush.msrb.mxu3 %v539_v43  ;;  %685 = vmatpush.msrb.mxu0 %v343_v44  ;;  %v432_v33 = vld [vmem:[#allocation5 + $0x390] sm:$0xff] }
  0x90   : > { %707 = vmatpush.msrb.mxu1 %v411_v45  ;;  %732 = vmatpush.msrb.mxu2 %v467_v46  ;;  %v488_v34 = vld [vmem:[#allocation5 + $0x550] sm:$0xff] }
  0x91   : > { %754 = vmatpush.msrb.mxu3 %v535_v47  ;;  %686 = vmatpush.msrb.mxu0 %v339_v48  ;;  %v556_v35 = vld [vmem:[#allocation5 + $0x770] sm:$0xff] }
  0x92   : > { %708 = vmatpush.msrb.mxu1 %v407_v49  ;;  %733 = vmatpush.msrb.mxu2 %v463_v50  ;;  %v360_v36 = vld [vmem:[#allocation5 + $0x150] sm:$0xff] }
  0x93   : > { %755 = vmatpush.msrb.mxu3 %v531_v51  ;;  %687 = vmatpush.msrb.mxu0 %v335_v52  ;;  %v428_v37 = vld [vmem:[#allocation5 + $0x370] sm:$0xff] }
  0x94   : > { %709 = vmatpush.msrb.mxu1 %v403_v53  ;;  %734 = vmatpush.msrb.mxu2 %v459_v54  ;;  %v484_v38 = vld [vmem:[#allocation5 + $0x530] sm:$0xff] }
  0x95   : > { %756 = vmatpush.msrb.mxu3 %v527_v55  ;;  %688 = vmatpush.msrb.mxu0 %v331_v56  ;;  %v552_v39 = vld [vmem:[#allocation5 + $0x750] sm:$0xff] }
  0x96   : > { %710 = vmatpush.msrb.mxu1 %v399_v57  ;;  %735 = vmatpush.msrb.mxu2 %v455_v58  ;;  %v356_v40 = vld [vmem:[#allocation5 + $0x130] sm:$0xff] }
  0x97   : > { %757 = vmatpush.msrb.mxu3 %v523_v59  ;;  %689 = vmatpush.msrb.mxu0 %v327_v60  ;;  %v424_v41 = vld [vmem:[#allocation5 + $0x350] sm:$0xff] }
  0x98   : > { %711 = vmatpush.msrb.mxu1 %v395_v61  ;;  %736 = vmatpush.msrb.mxu2 %v451_v63  ;;  %v480_v42 = vld [vmem:[#allocation5 + $0x510] sm:$0xff] }
  0x99   : > { %758 = vmatpush.msrb.mxu3 %v519_v0  ;;  %690 = vmatpush.msrb.mxu0 %v323_v3  ;;  %v548_v43 = vld [vmem:[#allocation5 + $0x730] sm:$0xff] }
  0x9a   : > { %712 = vmatpush.msrb.mxu1 %v391_v4  ;;  %737 = vmatpush.msrb.mxu2 %v447_v5  ;;  %v352_v44 = vld [vmem:[#allocation5 + $0x110] sm:$0xff] }
  0x9b   : > { %759 = vmatpush.msrb.mxu3 %v515_v6  ;;  %738 = vmatmul.f32.vlgmr.msrb.gmra.mxu2 %v2808_v62  ;;  %v420_v45 = vld [vmem:[#allocation5 + $0x330] sm:$0xff] }
  0x9c   : > { %691 = vmatpush.msrb.mxu0 %v319_v7  ;;  %814 = vmatpush.msra.mxu2 %v508_v9  ;;  %v476_v46 = vld [vmem:[#allocation5 + $0x4f0] sm:$0xff] }
  0x9d   : > { %713 = vmatpush.msrb.mxu1 %v387_v10  ;;  %760 = vmatpush.msrb.mxu3 %v511_v11  ;;  %v544_v47 = vld [vmem:[#allocation5 + $0x710] sm:$0xff] }
  0x9e   : > { %692 = vmatmul.f32.vlgmr.msrb.gmra.mxu0 %v2811_v1  ;;  %761 = vmatmul.f32.vlgmr.msrb.gmra.mxu3 %v2814_v2  ;;  %v348_v48 = vld [vmem:[#allocation5 + $0xf0] sm:$0xff] }
  0x9f   : > { %768 = vmatpush.msra.mxu0 %v380_v12  ;;  %815 = vmatpush.msra.mxu2 %v504_v13  ;;  %v416_v49 = vld [vmem:[#allocation5 + $0x310] sm:$0xff] }
  0xa0   : > { %837 = vmatpush.msra.mxu3 %v572_v14  ;;  %714 = vmatpush.msrb.mxu1 %v383_v15  ;;  %v472_v50 = vld [vmem:[#allocation5 + $0x4d0] sm:$0xff] }
  0xa1   : > { %769 = vmatpush.msra.mxu0 %v376_v17  ;;  %715 = vmatmul.f32.vlgmr.msrb.gmra.mxu1 %v2820_v8  ;;  %v540_v51 = vld [vmem:[#allocation5 + $0x6f0] sm:$0xff] }
  0xa2   : > { %816 = vmatpush.msra.mxu2 %v500_v18  ;;  %791 = vmatpush.msra.mxu1 %v444_v19  ;;  %v344_v52 = vld [vmem:[#allocation5 + $0xd0] sm:$0xff]  ;;  %v509_v18 = vld [vmem:[#allocation5 + $0x5f8] sm:$0xff] }
  0xa3   : > { %838 = vmatpush.msra.mxu3 %v568_v20  ;;  %770 = vmatpush.msra.mxu0 %v372_v23  ;;  %v412_v53 = vld [vmem:[#allocation5 + $0x2f0] sm:$0xff]  ;;  %v381_v23 = vld [vmem:[#allocation5 + $0x1f8] sm:$0xff] }
  0xa4   : > { %817 = vmatpush.msra.mxu2 %v496_v24  ;;  %792 = vmatpush.msra.mxu1 %v440_v25  ;;  %v468_v54 = vld [vmem:[#allocation5 + $0x4b0] sm:$0xff]  ;;  %v505_v24 = vld [vmem:[#allocation5 + $0x5d8] sm:$0xff] }
  0xa5   : > { %839 = vmatpush.msra.mxu3 %v564_v26  ;;  %741 = vmatmul.f32.gmra.mxu2 %v2824_v16  ;;  %v536_v55 = vld [vmem:[#allocation5 + $0x6d0] sm:$0xff]  ;;  %v573_v25 = vld [vmem:[#allocation5 + $0x7f8] sm:$0xff] }
  0xa6   : > { %771 = vmatpush.msra.mxu0 %v368_v28  ;;  %793 = vmatpush.msra.mxu1 %v436_v29  ;;  %v340_v56 = vld [vmem:[#allocation5 + $0xb0] sm:$0xff]  ;;  %v377_v28 = vld [vmem:[#allocation5 + $0x1d8] sm:$0xff] }
  0xa7   : > { %818 = vmatpush.msra.mxu2 %v492_v30  ;;  %840 = vmatpush.msra.mxu3 %v560_v31  ;;  %v408_v57 = vld [vmem:[#allocation5 + $0x2d0] sm:$0xff]  ;;  %v501_v29 = vld [vmem:[#allocation5 + $0x5b8] sm:$0xff] }
  0xa8   : > { %695 = vmatmul.f32.gmra.mxu0 %v2827_v21  ;;  %764 = vmatmul.f32.gmra.mxu3 %v2831_v22  ;;  %v464_v58 = vld [vmem:[#allocation5 + $0x490] sm:$0xff]  ;;  %v445_v30 = vld [vmem:[#allocation5 + $0x3f8] sm:$0xff] }
  0xa9   : > { %772 = vmatpush.msra.mxu0 %v364_v32  ;;  %794 = vmatpush.msra.mxu1 %v432_v33  ;;  %v532_v59 = vld [vmem:[#allocation5 + $0x6b0] sm:$0xff]  ;;  %v569_v31 = vld [vmem:[#allocation5 + $0x7d8] sm:$0xff] }
  0xaa   : > { %819 = vmatpush.msra.mxu2 %v488_v34  ;;  %841 = vmatpush.msra.mxu3 %v556_v35  ;;  %v336_v60 = vld [vmem:[#allocation5 + $0x90] sm:$0xff]  ;;  %v373_v32 = vld [vmem:[#allocation5 + $0x1b8] sm:$0xff] }
  0xab   : > { %718 = vmatmul.f32.gmra.mxu1 %v2835_v27  ;;  %773 = vmatpush.msra.mxu0 %v360_v36  ;;  %v404_v61 = vld [vmem:[#allocation5 + $0x2b0] sm:$0xff]  ;;  %v497_v33 = vld [vmem:[#allocation5 + $0x598] sm:$0xff] }
  0xac   : > { %795 = vmatpush.msra.mxu1 %v428_v37  ;;  %820 = vmatpush.msra.mxu2 %v484_v38  ;;  %v460_v63 = vld [vmem:[#allocation5 + $0x470] sm:$0xff]  ;;  %v441_v34 = vld [vmem:[#allocation5 + $0x3d8] sm:$0xff] }
  0xad   : > { %842 = vmatpush.msra.mxu3 %v552_v39  ;;  %774 = vmatpush.msra.mxu0 %v356_v40  ;;  %v528_v0 = vld [vmem:[#allocation5 + $0x690] sm:$0xff]  ;;  %v565_v35 = vld [vmem:[#allocation5 + $0x7b8] sm:$0xff] }
  0xae   : > { %796 = vmatpush.msra.mxu1 %v424_v41  ;;  %821 = vmatpush.msra.mxu2 %v480_v42  ;;  %v332_v3 = vld [vmem:[#allocation5 + $0x70] sm:$0xff]  ;;  %v369_v36 = vld [vmem:[#allocation5 + $0x198] sm:$0xff] }
  0xaf   : > { %843 = vmatpush.msra.mxu3 %v548_v43  ;;  %775 = vmatpush.msra.mxu0 %v352_v44  ;;  %v400_v4 = vld [vmem:[#allocation5 + $0x290] sm:$0xff]  ;;  %v437_v37 = vld [vmem:[#allocation5 + $0x3b8] sm:$0xff] }
  0xb0   : > { %797 = vmatpush.msra.mxu1 %v420_v45  ;;  %822 = vmatpush.msra.mxu2 %v476_v46  ;;  %v456_v5 = vld [vmem:[#allocation5 + $0x450] sm:$0xff]  ;;  %v493_v38 = vld [vmem:[#allocation5 + $0x578] sm:$0xff] }
  0xb1   : > { %844 = vmatpush.msra.mxu3 %v544_v47  ;;  %776 = vmatpush.msra.mxu0 %v348_v48  ;;  %v524_v6 = vld [vmem:[#allocation5 + $0x670] sm:$0xff]  ;;  %v561_v39 = vld [vmem:[#allocation5 + $0x798] sm:$0xff] }
  0xb2   : > { %798 = vmatpush.msra.mxu1 %v416_v49  ;;  %823 = vmatpush.msra.mxu2 %v472_v50  ;;  %v328_v7 = vld [vmem:[#allocation5 + $0x50] sm:$0xff]  ;;  %v365_v40 = vld [vmem:[#allocation5 + $0x178] sm:$0xff] }
  0xb3   : > { %845 = vmatpush.msra.mxu3 %v540_v51  ;;  %777 = vmatpush.msra.mxu0 %v344_v52  ;;  %v396_v9 = vld [vmem:[#allocation5 + $0x270] sm:$0xff]  ;;  %v433_v41 = vld [vmem:[#allocation5 + $0x398] sm:$0xff] }
  0xb4   : > { %799 = vmatpush.msra.mxu1 %v412_v53  ;;  %824 = vmatpush.msra.mxu2 %v468_v54  ;;  %v452_v10 = vld [vmem:[#allocation5 + $0x430] sm:$0xff]  ;;  %v489_v42 = vld [vmem:[#allocation5 + $0x558] sm:$0xff] }
  0xb5   : > { %846 = vmatpush.msra.mxu3 %v536_v55  ;;  %778 = vmatpush.msra.mxu0 %v340_v56  ;;  %v520_v11 = vld [vmem:[#allocation5 + $0x650] sm:$0xff]  ;;  %v557_v43 = vld [vmem:[#allocation5 + $0x778] sm:$0xff] }
  0xb6   : > { %800 = vmatpush.msra.mxu1 %v408_v57  ;;  %825 = vmatpush.msra.mxu2 %v464_v58  ;;  %v324_v12 = vld [vmem:[#allocation5 + $0x30] sm:$0xff]  ;;  %v361_v44 = vld [vmem:[#allocation5 + $0x158] sm:$0xff] }
  0xb7   : > { %847 = vmatpush.msra.mxu3 %v532_v59  ;;  %779 = vmatpush.msra.mxu0 %v336_v60  ;;  %v392_v13 = vld [vmem:[#allocation5 + $0x250] sm:$0xff]  ;;  %v429_v45 = vld [vmem:[#allocation5 + $0x378] sm:$0xff] }
  0xb8   : > { %801 = vmatpush.msra.mxu1 %v404_v61  ;;  %826 = vmatpush.msra.mxu2 %v460_v63  ;;  %v448_v14 = vld [vmem:[#allocation5 + $0x410] sm:$0xff]  ;;  %v485_v46 = vld [vmem:[#allocation5 + $0x538] sm:$0xff] }
  0xb9   : > { %848 = vmatpush.msra.mxu3 %v528_v0  ;;  %780 = vmatpush.msra.mxu0 %v332_v3  ;;  %v516_v15 = vld [vmem:[#allocation5 + $0x630] sm:$0xff]  ;;  %v553_v47 = vld [vmem:[#allocation5 + $0x758] sm:$0xff] }
  0xba   : > { %802 = vmatpush.msra.mxu1 %v400_v4  ;;  %827 = vmatpush.msra.mxu2 %v456_v5  ;;  %v320_v17 = vld [vmem:[#allocation5 + $0x10] sm:$0xff]  ;;  %v357_v48 = vld [vmem:[#allocation5 + $0x138] sm:$0xff] }
  0xbb   : > { %849 = vmatpush.msra.mxu3 %v524_v6  ;;  %781 = vmatpush.msra.mxu0 %v328_v7  ;;  %v388_v19 = vld [vmem:[#allocation5 + $0x230] sm:$0xff]  ;;  %v425_v49 = vld [vmem:[#allocation5 + $0x358] sm:$0xff] }
  0xbc   : > { %803 = vmatpush.msra.mxu1 %v396_v9  ;;  %828 = vmatpush.msra.mxu2 %v452_v10  ;;  %v512_v20 = vld [vmem:[#allocation5 + $0x610] sm:$0xff]  ;;  %v481_v50 = vld [vmem:[#allocation5 + $0x518] sm:$0xff] }
  0xbd   : > { %850 = vmatpush.msra.mxu3 %v520_v11  ;;  %782 = vmatpush.msra.mxu0 %v324_v12  ;;  %v384_v26 = vld [vmem:[#allocation5 + $0x210] sm:$0xff]  ;;  %v549_v51 = vld [vmem:[#allocation5 + $0x738] sm:$0xff] }
  0xbe   : > { %804 = vmatpush.msra.mxu1 %v392_v13  ;;  %829 = vmatpush.msra.mxu2 %v448_v14  ;;  %v353_v52 = vld [vmem:[#allocation5 + $0x118] sm:$0xff] }
  0xbf   : > { %851 = vmatpush.msra.mxu3 %v516_v15  ;;  %830 = vmatmul.f32.vlgmr.msra.gmra.mxu2 %v2808_v62  ;;  %v421_v53 = vld [vmem:[#allocation5 + $0x338] sm:$0xff] }
  0xc0   : > { %783 = vmatpush.msra.mxu0 %v320_v17  ;;  %906 = vmatpush.msrb.mxu2 %v509_v18  ;;  %v477_v54 = vld [vmem:[#allocation5 + $0x4f8] sm:$0xff] }
  0xc1   : > { %805 = vmatpush.msra.mxu1 %v388_v19  ;;  %852 = vmatpush.msra.mxu3 %v512_v20  ;;  %v545_v55 = vld [vmem:[#allocation5 + $0x718] sm:$0xff] }
  0xc2   : > { %784 = vmatmul.f32.vlgmr.msra.gmra.mxu0 %v2811_v1  ;;  %853 = vmatmul.f32.vlgmr.msra.gmra.mxu3 %v2814_v2  ;;  %v349_v56 = vld [vmem:[#allocation5 + $0xf8] sm:$0xff] }
  0xc3   : > { %860 = vmatpush.msrb.mxu0 %v381_v23  ;;  %907 = vmatpush.msrb.mxu2 %v505_v24  ;;  %v417_v57 = vld [vmem:[#allocation5 + $0x318] sm:$0xff] }
  0xc4   : > { %929 = vmatpush.msrb.mxu3 %v573_v25  ;;  %806 = vmatpush.msra.mxu1 %v384_v26  ;;  %v473_v58 = vld [vmem:[#allocation5 + $0x4d8] sm:$0xff] }
  0xc5   : > { %861 = vmatpush.msrb.mxu0 %v377_v28  ;;  %807 = vmatmul.f32.vlgmr.msra.gmra.mxu1 %v2820_v8  ;;  %v541_v59 = vld [vmem:[#allocation5 + $0x6f8] sm:$0xff] }
  0xc6   : > { %908 = vmatpush.msrb.mxu2 %v501_v29  ;;  %883 = vmatpush.msrb.mxu1 %v445_v30  ;;  %v345_v60 = vld [vmem:[#allocation5 + $0xd8] sm:$0xff] }
  0xc7   : > { %930 = vmatpush.msrb.mxu3 %v569_v31  ;;  %862 = vmatpush.msrb.mxu0 %v373_v32  ;;  %v413_v61 = vld [vmem:[#allocation5 + $0x2f8] sm:$0xff] }
  0xc8   : > { %909 = vmatpush.msrb.mxu2 %v497_v33  ;;  %884 = vmatpush.msrb.mxu1 %v441_v34  ;;  %v469_v63 = vld [vmem:[#allocation5 + $0x4b8] sm:$0xff] }
  0xc9   : > { %931 = vmatpush.msrb.mxu3 %v565_v35  ;;  %833 = vmatmul.f32.gmra.mxu2 %v2824_v16  ;;  %v537_v0 = vld [vmem:[#allocation5 + $0x6d8] sm:$0xff] }
  0xca   : > { %863 = vmatpush.msrb.mxu0 %v369_v36  ;;  %885 = vmatpush.msrb.mxu1 %v437_v37  ;;  %v341_v3 = vld [vmem:[#allocation5 + $0xb8] sm:$0xff] }
  0xcb   : > { %910 = vmatpush.msrb.mxu2 %v493_v38  ;;  %932 = vmatpush.msrb.mxu3 %v561_v39  ;;  %v409_v4 = vld [vmem:[#allocation5 + $0x2d8] sm:$0xff] }
  0xcc   : > { %787 = vmatmul.f32.gmra.mxu0 %v2827_v21  ;;  %856 = vmatmul.f32.gmra.mxu3 %v2831_v22  ;;  %v465_v5 = vld [vmem:[#allocation5 + $0x498] sm:$0xff] }
  0xcd   : > { %864 = vmatpush.msrb.mxu0 %v365_v40  ;;  %886 = vmatpush.msrb.mxu1 %v433_v41  ;;  %v533_v6 = vld [vmem:[#allocation5 + $0x6b8] sm:$0xff] }
  0xce   : > { %911 = vmatpush.msrb.mxu2 %v489_v42  ;;  %933 = vmatpush.msrb.mxu3 %v557_v43  ;;  %v337_v7 = vld [vmem:[#allocation5 + $0x98] sm:$0xff] }
  0xcf   : > { %810 = vmatmul.f32.gmra.mxu1 %v2835_v27  ;;  %865 = vmatpush.msrb.mxu0 %v361_v44  ;;  %v405_v9 = vld [vmem:[#allocation5 + $0x2b8] sm:$0xff] }
  0xd0   : > { %887 = vmatpush.msrb.mxu1 %v429_v45  ;;  %912 = vmatpush.msrb.mxu2 %v485_v46  ;;  %v461_v10 = vld [vmem:[#allocation5 + $0x478] sm:$0xff] }
  0xd1   : > { %934 = vmatpush.msrb.mxu3 %v553_v47  ;;  %866 = vmatpush.msrb.mxu0 %v357_v48  ;;  %v529_v11 = vld [vmem:[#allocation5 + $0x698] sm:$0xff] }
  0xd2   : > { %888 = vmatpush.msrb.mxu1 %v425_v49  ;;  %913 = vmatpush.msrb.mxu2 %v481_v50  ;;  %v333_v12 = vld [vmem:[#allocation5 + $0x78] sm:$0xff] }
  0xd3   : > { %935 = vmatpush.msrb.mxu3 %v549_v51  ;;  %867 = vmatpush.msrb.mxu0 %v353_v52  ;;  %v401_v13 = vld [vmem:[#allocation5 + $0x298] sm:$0xff] }
  0xd4   : > { %889 = vmatpush.msrb.mxu1 %v421_v53  ;;  %914 = vmatpush.msrb.mxu2 %v477_v54  ;;  %v457_v14 = vld [vmem:[#allocation5 + $0x458] sm:$0xff] }
  0xd5   : > { %936 = vmatpush.msrb.mxu3 %v545_v55  ;;  %868 = vmatpush.msrb.mxu0 %v349_v56  ;;  %v525_v15 = vld [vmem:[#allocation5 + $0x678] sm:$0xff] }
  0xd6   : > { %890 = vmatpush.msrb.mxu1 %v417_v57  ;;  %915 = vmatpush.msrb.mxu2 %v473_v58  ;;  %v329_v17 = vld [vmem:[#allocation5 + $0x58] sm:$0xff] }
  0xd7   : > { %937 = vmatpush.msrb.mxu3 %v541_v59  ;;  %869 = vmatpush.msrb.mxu0 %v345_v60  ;;  %v397_v18 = vld [vmem:[#allocation5 + $0x278] sm:$0xff] }
  0xd8   : > { %891 = vmatpush.msrb.mxu1 %v413_v61  ;;  %916 = vmatpush.msrb.mxu2 %v469_v63  ;;  %v453_v19 = vld [vmem:[#allocation5 + $0x438] sm:$0xff] }
  0xd9   : > { %938 = vmatpush.msrb.mxu3 %v537_v0  ;;  %870 = vmatpush.msrb.mxu0 %v341_v3  ;;  %v521_v20 = vld [vmem:[#allocation5 + $0x658] sm:$0xff] }
  0xda   : > { %892 = vmatpush.msrb.mxu1 %v409_v4  ;;  %917 = vmatpush.msrb.mxu2 %v465_v5  ;;  %v325_v23 = vld [vmem:[#allocation5 + $0x38] sm:$0xff] }
  0xdb   : > { %939 = vmatpush.msrb.mxu3 %v533_v6  ;;  %871 = vmatpush.msrb.mxu0 %v337_v7  ;;  %v393_v24 = vld [vmem:[#allocation5 + $0x258] sm:$0xff] }
  0xdc   : > { %893 = vmatpush.msrb.mxu1 %v405_v9  ;;  %918 = vmatpush.msrb.mxu2 %v461_v10  ;;  %v449_v25 = vld [vmem:[#allocation5 + $0x418] sm:$0xff] }
  0xdd   : > { %940 = vmatpush.msrb.mxu3 %v529_v11  ;;  %872 = vmatpush.msrb.mxu0 %v333_v12  ;;  %v517_v26 = vld [vmem:[#allocation5 + $0x638] sm:$0xff] }
  0xde   : > { %894 = vmatpush.msrb.mxu1 %v401_v13  ;;  %919 = vmatpush.msrb.mxu2 %v457_v14  ;;  %v321_v28 = vld [vmem:[#allocation5 + $0x18] sm:$0xff] }
  0xdf   : > { %941 = vmatpush.msrb.mxu3 %v525_v15  ;;  %873 = vmatpush.msrb.mxu0 %v329_v17  ;;  %v389_v29 = vld [vmem:[#allocation5 + $0x238] sm:$0xff] }
  0xe0   : > { %895 = vmatpush.msrb.mxu1 %v397_v18  ;;  %920 = vmatpush.msrb.mxu2 %v453_v19  ;;  %v513_v30 = vld [vmem:[#allocation5 + $0x618] sm:$0xff] }
  0xe1   : > { %942 = vmatpush.msrb.mxu3 %v521_v20  ;;  %874 = vmatpush.msrb.mxu0 %v325_v23  ;;  %v385_v31 = vld [vmem:[#allocation5 + $0x218] sm:$0xff] }
  0xe2   : > { %896 = vmatpush.msrb.mxu1 %v393_v24  ;;  %921 = vmatpush.msrb.mxu2 %v449_v25 }
  0xe3   : > { %943 = vmatpush.msrb.mxu3 %v517_v26  ;;  %922 = vmatmul.f32.vlgmr.msrb.gmra.mxu2 %v2808_v62  ;;  %v2863_v62 = vld [vmem:[#allocation7] sm:$0xf] }
  0xe4   : > { %875 = vmatpush.msrb.mxu0 %v321_v28  ;;  %897 = vmatpush.msrb.mxu1 %v389_v29  ;;  %v576_v32 = vperm.slane %v2863_v62, 0  ;;  %v577_v13 = vperm.slane %v2863_v62, 1 }
  0xe5   : > { %944 = vmatpush.msrb.mxu3 %v513_v30  ;;  %876 = vmatmul.f32.vlgmr.msrb.gmra.mxu0 %v2811_v1 }
  0xe6   : > { %945 = vmatmul.f32.vlgmr.msrb.gmra.mxu3 %v2814_v2  ;;  %898 = vmatpush.msrb.mxu1 %v385_v31 }
  0xe7   : > { %899 = vmatmul.f32.vlgmr.msrb.gmra.mxu1 %v2820_v8 }
  0xeb   : > { %925 = vmatmul.f32.gmra.mxu2 %v2824_v16 }
  0xed   : > { %879 = vmatmul.f32.gmra.mxu0 %v2827_v21 }
  0xee   : > { %948 = vmatmul.f32.gmra.mxu3 %v2831_v22 }
  0xef   : > { %902 = vmatmul.f32.gmra.mxu1 %v2835_v27 }
  0xf7   : > { %v601_v33 = vpop.f32.mrf.mxu0 }
  0xf8   : > { %v602_v34 = vadd.f32 %v601_v33, %v576_v32 }
  0xfa   : > { %v624_v1 = vpop.f32.mrf.mxu1 }
  0xfb   : > { %v625_v35 = vadd.f32 %v624_v1, %v602_v34  ;;  %v647_v2 = vpop.f32.mrf.mxu2 }
  0xfd   : > { %v648_v36 = vadd.f32 %v647_v2, %v625_v35  ;;  %v670_v37 = vpop.f32.mrf.mxu3 }
  0xff   : > { %v2866_v8 = vadd.f32 %v670_v37, %v648_v36 }
 0x101   : > { %v604_v16 = vpop.f32.mrf.mxu0  ;;  %v2869_v21 = vmul.f32 0.70710677, %v2866_v8 }
 0x102   : > { %v605_v22 = vadd.f32 %v604_v16, %v576_v32 }
 0x103   : > { %v968_v27 = vmul.f32 %v2869_v21, %v2869_v21 }
 0x104   : > { %v627_v38 = vpop.f32.mrf.mxu1  ;;  %v650_v40 = vpop.f32.mrf.mxu2 }
 0x105   : > { %v628_v39 = vadd.f32 %v627_v38, %v605_v22  ;;  %v969_v41 = vmin.f32 %v968_v27, 16.0 }
 0x107   : > { %v651_v42 = vadd.f32 %v650_v40, %v628_v39  ;;  %v970_v43 = vmul.f32 2.1237322e-06, %v969_v41  ;;  %v981_v44 = vmul.f32 3.8918573e-05, %v969_v41  ;;  %v673_v45 = vpop.f32.mrf.mxu3 }
 0x109   : > { %v2873_v46 = vadd.f32 %v673_v45, %v651_v42  ;;  %v971_v47 = vadd.f32 0.00028619796, %v970_v43  ;;  %v982_v48 = vadd.f32 0.001143296, %v981_v44 }
 0x10b   : > { %v2876_v49 = vmul.f32 0.70710677, %v2873_v46  ;;  %v972_v50 = vmul.f32 %v971_v47, %v969_v41  ;;  %v983_v51 = vmul.f32 %v982_v48, %v969_v41 }
 0x10d   : > { %v1128_v52 = vmul.f32 %v2876_v49, %v2876_v49  ;;  %v973_v53 = vadd.f32 0.0036580483, %v972_v50  ;;  %v984_v54 = vadd.f32 0.014752088, %v983_v51 }
 0x10f   : > { %v1129_v55 = vmin.f32 %v1128_v52, 16.0  ;;  %v985_v56 = vmul.f32 %v984_v54, %v969_v41  ;;  %v974_v57 = vmul.f32 %v973_v53, %v969_v41 }
 0x111   : > { %v1130_v58 = vmul.f32 2.1237322e-06, %v1129_v55  ;;  %v1141_v59 = vmul.f32 3.8918573e-05, %v1129_v55  ;;  %v986_v60 = vadd.f32 0.112945676, %v985_v56 }
 0x112   : > { %v975_v3 = vadd.f32 0.05243302, %v974_v57 }
 0x113   : > { %v1131_v61 = vadd.f32 0.00028619796, %v1130_v58  ;;  %v1142_v63 = vadd.f32 0.001143296, %v1141_v59  ;;  %v987_v0 = vmul.f32 %v986_v60, %v969_v41 }
 0x114   : > { %v976_v11 = vmul.f32 %v975_v3, %v969_v41 }
 0x115   : > { %v1132_v4 = vmul.f32 %v1131_v61, %v1129_v55  ;;  %v1143_v5 = vmul.f32 %v1142_v63, %v1129_v55  ;;  %v988_v6 = vadd.f32 0.4994258, %v987_v0 }
 0x116   : > { %v977_v19 = vadd.f32 0.18741608, %v976_v11 }
 0x117   : > { %v1133_v7 = vadd.f32 0.0036580483, %v1132_v4  ;;  %v1144_v9 = vadd.f32 0.014752088, %v1143_v5  ;;  %v989_v10 = vmul.f32 %v988_v6, %v969_v41 }
 0x118   : > { %v978_v30 = vmul.f32 %v977_v19, %v969_v41 }
 0x119   : > { %v1145_v12 = vmul.f32 %v1144_v9, %v1129_v55  ;;  %v990_v14 = vadd.f32 1.0, %v989_v10  ;;  %v1134_v15 = vmul.f32 %v1133_v7, %v1129_v55 }
 0x11a   : > { %v979_v37 = vadd.f32 1.1283791, %v978_v30 }
 0x11b   : > { %v1146_v17 = vadd.f32 0.112945676, %v1145_v12  ;;  %v693_v18 = vpop.f32.mrf.mxu0  ;;  %2367 = vrcp.f32 %v990_v14  ;;  %v1135_v24 = vadd.f32 0.05243302, %v1134_v15  ;;  %v1002_v27 = vand.u32 2147483648, %v990_v14 }
 0x11c   : > { %v694_v23 = vadd.f32 %v693_v18, %v577_v13  ;;  %v1000_v41 = vand.u32 2147483647, %v990_v14  ;;  %vm996_vm1 = vweird.f32 %v990_v14  ;;  %v980_v54 = vmul.f32 %v979_v37, %v2869_v21 }
 0x11d   : > { %v1147_v20 = vmul.f32 %v1146_v17, %v1129_v55  ;;  %v1136_v33 = vmul.f32 %v1135_v24, %v1129_v55  ;;  %v1003_v50 = vor.u32 1.1754944e-38, %v1002_v27  ;;  %v956_v27 = vmul.f32 0.5, %v2873_v46 }
 0x11e   : > { %v716_v26 = vpop.f32.mrf.mxu1  ;;  %v739_v28 = vpop.f32.mrf.mxu2  ;;  %vm1001_vm3 = vcmp.eq.f32.partialorder %v1000_v41, 8.507059e+37 }
 0x11f   : > { %v1148_v25 = vadd.f32 0.4994258, %v1147_v20  ;;  %v717_v29 = vadd.f32 %v716_v26, %v694_v23  ;;  %v1137_v38 = vadd.f32 0.18741608, %v1136_v33  ;;  %v1312_v33 = vlaneseq }
 0x121   : > { %v1149_v31 = vmul.f32 %v1148_v25, %v1129_v55  ;;  %v2368_v32 = vpop.eup %2367  ;;  %v740_v34 = vadd.f32 %v739_v28, %v717_v29  ;;  %v762_v1 = vpop.f32.mrf.mxu3  ;;  %v1138_v51 = vmul.f32 %v1137_v38, %v1129_v55  ;;  %v2921_v41 = vshrl.u32 %v1312_v33, 7 }
 0x122   : > { %v992_v35 = vmul.f32 %v2368_v32, %v990_v14  ;;  %vm997_vm0 = vweird.f32 %v2368_v32 }
 0x123   : > { %v1150_v2 = vadd.f32 1.0, %v1149_v31  ;;  %v2881_v36 = vadd.f32 %v762_v1, %v740_v34  ;;  %vm998_vm2 = vmor %vm996_vm1, %vm997_vm0  ;;  %v1139_v4 = vadd.f32 1.1283791, %v1138_v51  ;;  %vm1349_vm8 = vcmp.lt.s32.totalorder %v2921_v41, 1 }
 0x124   : > { %v993_v16 = vsub.f32 1.0, %v992_v35  ;;  %vm1376_vm9 = vcmp.lt.s32.totalorder %v2921_v41, 7 }
 0x125   : > { %2369 = vrcp.f32 %v1150_v2  ;;  %v696_v22 = vpop.f32.mrf.mxu0  ;;  %v2884_v39 = vmul.f32 0.70710677, %v2881_v36  ;;  %v1162_v7 = vand.u32 2147483648, %v1150_v2  ;;  %v1160_v11 = vand.u32 2147483647, %v1150_v2 }
 0x126   : > { %v994_v40 = vmul.f32 %v2368_v32, %v993_v16  ;;  %v697_v42 = vadd.f32 %v696_v22, %v577_v13  ;;  %v952_v13 = vmul.f32 0.5, %v2866_v8  ;;  %vm1156_vm5 = vweird.f32 %v1150_v2 }
 0x127   : > { %v1008_v43 = vmul.f32 %v2884_v39, %v2884_v39  ;;  %v1163_v23 = vor.u32 1.1754944e-38, %v1162_v7  ;;  %v1140_v26 = vmul.f32 %v1139_v4, %v2876_v49  ;;  %vm1161_vm7 = vcmp.eq.f32.partialorder %v1160_v11, 8.507059e+37 }
 0x128   : > { %v719_v44 = vpop.f32.mrf.mxu1  ;;  %v995_v45 = vadd.f32 %v2368_v32, %v994_v40  ;;  %v742_v48 = vpop.f32.mrf.mxu2  ;;  %v1319_v11 = vand.u32 15, %v2921_v41 }
 0x129   : > { %v720_v47 = vadd.f32 %v719_v44, %v697_v42  ;;  %v2888_v52 = vmin.f32 %v1008_v43, 16.0 }
 0x12a   : > { %v999_v56 = vsel %vm998_vm2, %v2368_v32, %v995_v45  ;;  %vm2970_vm10 = vcmp.gt.s32.totalorder %v1319_v11, 0 }
 0x12b   : > { %v2370_v53 = vpop.eup %2369  ;;  %v743_v57 = vadd.f32 %v742_v48, %v720_v47  ;;  %v1004_v58 = vsel %vm1001_vm3, %v1003_v50, %v999_v56  ;;  %v1010_v60 = vmul.f32 2.1237322e-06, %v2888_v52  ;;  %v765_v61 = vpop.f32.mrf.mxu3  ;;  %v1021_v0 = vmul.f32 3.8918573e-05, %v2888_v52 }
 0x12c   : > { %v1152_v59 = vmul.f32 %v2370_v53, %v1150_v2  ;;  %v1005_v63 = vmul.f32 %v1004_v58, %v980_v54  ;;  %vm1157_vm4 = vweird.f32 %v2370_v53  ;;  %v578_v47 = vperm.slane %v2863_v62, 2 }
 0x12d   : > { %v2893_v3 = vadd.f32 %v765_v61, %v743_v57  ;;  %v1011_v5 = vadd.f32 0.00028619796, %v1010_v60  ;;  %v1022_v9 = vadd.f32 0.001143296, %v1021_v0  ;;  %vm1158_vm6 = vmor %vm1156_vm5, %vm1157_vm4 }
 0x12e   : > { %v1153_v55 = vsub.f32 1.0, %v1152_v59  ;;  %v2245_v6 = vclamps-f32 %v1005_v63, 1.0 }
 0x12f   : > { %v2896_v21 = vmul.f32 0.70710677, %v2893_v3  ;;  %v1012_v12 = vmul.f32 %v1011_v5, %v2888_v52  ;;  %v1023_v15 = vmul.f32 %v1022_v9, %v2888_v52 }
 0x130   : > { %v1154_v10 = vmul.f32 %v2370_v53, %v1153_v55  ;;  %v1288_v14 = vadd.f32 1.0, %v2245_v6 }
 0x131   : > { %v1168_v17 = vmul.f32 %v2896_v21, %v2896_v21  ;;  %v1013_v19 = vadd.f32 0.0036580483, %v1012_v12  ;;  %v1024_v24 = vadd.f32 0.014752088, %v1023_v15  ;;  %v1314_v12 = vadd.s32 8, %v2921_v41 }
 0x132   : > { %v1155_v18 = vadd.f32 %v2370_v53, %v1154_v10  ;;  %v2903_v20 = vmul.f32 %v1288_v14, %v952_v13 }
 0x133   : > { %v2905_v25 = vmin.f32 %v1168_v17, 16.0  ;;  %v1025_v29 = vmul.f32 %v1024_v24, %v2888_v52  ;;  %v1014_v49 = vmul.f32 %v1013_v19, %v2888_v52 }
 0x134   : > { %4072 = vst [vmem:[#allocation16_spill] sm:$0xff] %v2903_v20  ;;  %v1159_v28 = vsel %vm1158_vm6, %v2370_v53, %v1155_v18  ;;  %1521 = vrot.lane.b32.xlu0 %v2903_v20, %s2631_s24  ;;  %1497 = vrot.lane.b32.xlu1 %v2903_v20, %s2632_s29  ;;  %v1341_v51 = vrot.slane %v2903_v20, 7  ;;  %v1368_v6 = vrot.slane %v2903_v20, 1 }
 0x135   : > { %v1164_v8 = vsel %vm1161_vm7, %v1163_v23, %v1159_v28  ;;  %v1170_v30 = vmul.f32 2.1237322e-06, %v2905_v25  ;;  %v1181_v31 = vmul.f32 3.8918573e-05, %v2905_v25  ;;  %v1026_v34 = vadd.f32 0.112945676, %v1025_v29 }
 0x136   : > { %v1165_v32 = vmul.f32 %v1164_v8, %v1140_v26  ;;  %v1015_v40 = vadd.f32 0.05243302, %v1014_v49  ;;  %v1326_v8 = vand.u32 15, %v1314_v12 }
 0x137   : > { %v1171_v1 = vadd.f32 0.00028619796, %v1170_v30  ;;  %v1182_v35 = vadd.f32 0.001143296, %v1181_v31  ;;  %v1027_v37 = vmul.f32 %v1026_v34, %v2888_v52 }
 0x138   : > { %v2249_v2 = vclamps-f32 %v1165_v32, 1.0  ;;  %v1016_v46 = vmul.f32 %v1015_v40, %v2888_v52  ;;  %vm2991_vm13 = vcmp.lt.s32.totalorder %v1326_v8, 15  ;;  %v953_v8 = vmul.f32 0.5, %v2881_v36 }
 0x139   : > { %v1172_v16 = vmul.f32 %v1171_v1, %v2905_v25  ;;  %v1183_v22 = vmul.f32 %v1182_v35, %v2905_v25  ;;  %v1028_v42 = vadd.f32 0.4994258, %v1027_v37 }
 0x13a   : > { %v1292_v38 = vadd.f32 1.0, %v2249_v2  ;;  %v1017_v63 = vadd.f32 0.18741608, %v1016_v46 }
 0x13b   : > { %v1173_v43 = vadd.f32 0.0036580483, %v1172_v16  ;;  %v1184_v44 = vadd.f32 0.014752088, %v1183_v22  ;;  %v1029_v48 = vmul.f32 %v1028_v42, %v2888_v52 }
 0x13c   : > { %v2923_v45 = vmul.f32 %v1292_v38, %v956_v27  ;;  %v1018_v13 = vmul.f32 %v1017_v63, %v2888_v52 }
 0x13d   : > { %v1185_v50 = vmul.f32 %v1184_v44, %v2905_v25  ;;  %v2936_v54 = vadd.f32 1.0, %v1029_v48  ;;  %v1174_v56 = vmul.f32 %v1173_v43, %v2905_v25 }
 0x13e   : > { %4073 = vst [vmem:[#allocation17_spill] sm:$0xff] %v2923_v45  ;;  %1499 = vrot.lane.b32.xlu2 %v2923_v45, %s2632_s29  ;;  %1523 = vrot.lane.b32.xlu1 %v2923_v45, %s2631_s24  ;;  %v1345_v53 = vrot.slane %v2923_v45, 7  ;;  %v1372_v61 = vrot.slane %v2923_v45, 1  ;;  %v1019_v29 = vadd.f32 1.1283791, %v1018_v13 }
 0x13f   : > { %v1186_v57 = vadd.f32 0.112945676, %v1185_v50  ;;  %v785_v58 = vpop.f32.mrf.mxu0  ;;  %2371 = vrcp.f32 %v2936_v54  ;;  %v1175_v4 = vadd.f32 0.05243302, %v1174_v56  ;;  %v1042_v32 = vand.u32 2147483648, %v2936_v54 }
 0x140   : > { %v786_v59 = vadd.f32 %v785_v58, %v578_v47  ;;  %v2941_v60 = vsel %vm1349_vm8, %v1341_v51, %v1345_v53  ;;  %v2952_v10 = vsel %vm1376_vm9, %v1368_v6, %v1372_v61  ;;  %v1354_v31 = vsel %vm1349_vm8, %v1345_v53, %v1341_v51 }
 0x141   : > { %1395 = vrot.lane.b32.xlu0 %v2941_v60, %s2632_s29  ;;  %v1187_v0 = vmul.f32 %v1186_v57, %v2905_v25  ;;  %v1176_v19 = vmul.f32 %v1175_v4, %v2905_v25  ;;  %v1040_v35 = vand.u32 2147483647, %v2936_v54  ;;  %v2986_v27 = vsel %vm2970_vm10, %v1354_v31, 0.0 }
 0x142   : > { %v808_v55 = vpop.f32.mrf.mxu1  ;;  %v831_v5 = vpop.f32.mrf.mxu2  ;;  %vm1036_vm12 = vweird.f32 %v2936_v54  ;;  %v1020_v43 = vmul.f32 %v1019_v29, %v2884_v39  ;;  %v1043_v44 = vor.u32 1.1754944e-38, %v1042_v32 }
 0x143   : > { %v1188_v7 = vadd.f32 0.4994258, %v1187_v0  ;;  %v809_v9 = vadd.f32 %v808_v55, %v786_v59  ;;  %v1177_v49 = vadd.f32 0.18741608, %v1176_v19  ;;  %vm1041_vm15 = vcmp.eq.f32.partialorder %v1040_v35, 8.507059e+37 }
 0x145   : > { %v1189_v14 = vmul.f32 %v1188_v7, %v2905_v25  ;;  %v832_v15 = vadd.f32 %v831_v5, %v809_v9  ;;  %v854_v17 = vpop.f32.mrf.mxu3  ;;  %v2372_v18 = vpop.eup %2371 }
 0x146   : > { %1629 = vrot.lane.b32.xlu1 %v2952_v10, %s2631_s24  ;;  %1605 = vrot.lane.b32.xlu2 %v2952_v10, %s2632_s29  ;;  %v1032_v23 = vmul.f32 %v2372_v18, %v2936_v54  ;;  %vm1037_vm11 = vweird.f32 %v2372_v18  ;;  %v1381_v54 = vsel %vm1376_vm9, %v1372_v61, %v1368_v6 }
 0x147   : > { %v2964_v24 = vadd.f32 1.0, %v1189_v14  ;;  %v2966_v26 = vadd.f32 %v854_v17, %v832_v15  ;;  %vm1038_vm14 = vmor %vm1036_vm12, %vm1037_vm11  ;;  %v3010_v55 = vsel %vm2991_vm13, %v1381_v54, 0.0 }
 0x148   : > { %v1033_v30 = vsub.f32 1.0, %v1032_v23 }
 0x149   : > { %v788_v52 = vpop.f32.mrf.mxu0  ;;  %1422 = vrot.lane.b32.xlu0 %v2941_v60, %s2631_s24  ;;  %2373 = vrcp.f32 %v2964_v24  ;;  %v2979_v34 = vmul.f32 0.70710677, %v2966_v26  ;;  %v1202_v5 = vand.u32 2147483648, %v2964_v24  ;;  %v1200_v11 = vand.u32 2147483647, %v2964_v24 }
 0x14a   : > { %v1034_v1 = vmul.f32 %v2372_v18, %v1033_v30  ;;  %v789_v2 = vadd.f32 %v788_v52, %v578_v47  ;;  %v1178_v47 = vmul.f32 %v1177_v49, %v2905_v25  ;;  %vm1196_vm1 = vweird.f32 %v2964_v24 }
 0x14b   : > { %v1048_v16 = vmul.f32 %v2979_v34, %v2979_v34  ;;  %v1203_v19 = vor.u32 1.1754944e-38, %v1202_v5  ;;  %vm1201_vm3 = vcmp.eq.f32.partialorder %v1200_v11, 8.507059e+37 }
 0x14c   : > { %v811_v37 = vpop.f32.mrf.mxu1  ;;  %v834_v22 = vpop.f32.mrf.mxu2  ;;  %v1035_v38 = vadd.f32 %v2372_v18, %v1034_v1  ;;  %v1179_v63 = vadd.f32 1.1283791, %v1178_v47 }
 0x14d   : > { %v812_v40 = vadd.f32 %v811_v37, %v789_v2  ;;  %v2997_v48 = vmin.f32 %v1048_v16, 16.0 }
 0x14e   : > { %1420 = vrot.lane.b32.xlu2 %v2986_v27, %s2631_s24  ;;  %v1039_v46 = vsel %vm1038_vm14, %v2372_v18, %v1035_v38  ;;  %v1180_v29 = vmul.f32 %v1179_v63, %v2896_v21 }
 0x14f   : > { %v2374_v50 = vpop.eup %2373  ;;  %v835_v51 = vadd.f32 %v834_v22, %v812_v40  ;;  %v857_v53 = vpop.f32.mrf.mxu3  ;;  %v1044_v56 = vsel %vm1041_vm15, %v1043_v44, %v1039_v46  ;;  %v1050_v58 = vmul.f32 2.1237322e-06, %v2997_v48  ;;  %v1061_v25 = vmul.f32 3.8918573e-05, %v2997_v48 }
 0x150   : > { %v1192_v57 = vmul.f32 %v2374_v50, %v2964_v24  ;;  %v1045_v39 = vmul.f32 %v1044_v56, %v1020_v43  ;;  %vm1197_vm0 = vweird.f32 %v2374_v50  ;;  %v957_v43 = vmul.f32 0.5, %v2893_v3 }
 0x151   : > { %1393 = vrot.lane.b32.xlu0 %v2986_v27, %s2632_s29  ;;  %v3006_v59 = vadd.f32 %v857_v53, %v835_v51  ;;  %v1051_v4 = vadd.f32 0.00028619796, %v1050_v58  ;;  %v1062_v6 = vadd.f32 0.001143296, %v1061_v25  ;;  %vm1198_vm2 = vmor %vm1196_vm1, %vm1197_vm0  ;;  %v579_v51 = vperm.slane %v2863_v62, 3 }
 0x152   : > { %v1193_v0 = vsub.f32 1.0, %v1192_v57  ;;  %v2246_v61 = vclamps-f32 %v1045_v39, 1.0 }
 0x153   : > { %v3014_v7 = vmul.f32 0.70710677, %v3006_v59  ;;  %v1052_v12 = vmul.f32 %v1051_v4, %v2997_v48  ;;  %v1063_v13 = vmul.f32 %v1062_v6, %v2997_v48 }
 0x154   : > { %v1194_v9 = vmul.f32 %v2374_v50, %v1193_v0  ;;  %v1289_v18 = vadd.f32 1.0, %v2246_v61 }
 0x155   : > { %v1208_v14 = vmul.f32 %v3014_v7, %v3014_v7  ;;  %v1053_v17 = vadd.f32 0.0036580483, %v1052_v12  ;;  %v1064_v23 = vadd.f32 0.014752088, %v1063_v13 }
 0x156   : > { %1631 = vrot.lane.b32.xlu2 %v3010_v55, %s2631_s24  ;;  %v1195_v15 = vadd.f32 %v2374_v50, %v1194_v9  ;;  %v3034_v2 = vmul.f32 %v1289_v18, %v953_v8 }
 0x157   : > { %v3024_v52 = vmin.f32 %v1208_v14, 16.0  ;;  %v1065_v32 = vmul.f32 %v1064_v23, %v2997_v48  ;;  %v1054_v35 = vmul.f32 %v1053_v17, %v2997_v48 }
 0x158   : > { %v1199_v30 = vsel %vm1198_vm2, %v2374_v50, %v1195_v15  ;;  %4078 = vst [vmem:[#allocation18_spill] sm:$0xff] %v3034_v2  ;;  %v1342_v3 = vrot.slane %v3034_v2, 7  ;;  %v1369_v14 = vrot.slane %v3034_v2, 1 }
 0x159   : > { %1607 = vrot.lane.b32.xlu0 %v3010_v55, %s2632_s29  ;;  %v1204_v31 = vsel %vm1201_vm3, %v1203_v19, %v1199_v30  ;;  %v1210_v24 = vmul.f32 2.1237322e-06, %v3024_v52  ;;  %v1221_v49 = vmul.f32 3.8918573e-05, %v3024_v52  ;;  %v1066_v36 = vadd.f32 0.112945676, %v1065_v32 }
 0x15a   : > { %v1205_v1 = vmul.f32 %v1204_v31, %v1180_v29  ;;  %v1055_v47 = vadd.f32 0.05243302, %v1054_v35 }
 0x15b   : > { %v1211_v37 = vadd.f32 0.00028619796, %v1210_v24  ;;  %v1222_v21 = vadd.f32 0.001143296, %v1221_v49  ;;  %v1067_v22 = vmul.f32 %v1066_v36, %v2997_v48 }
 0x15c   : > { %v2250_v16 = vclamps-f32 %v1205_v1, 1.0  ;;  %v1056_v58 = vmul.f32 %v1055_v47, %v2997_v48 }
 0x15d   : > { %v1212_v38 = vmul.f32 %v1211_v37, %v3024_v52  ;;  %v1223_v40 = vmul.f32 %v1222_v21, %v3024_v52  ;;  %v1068_v50 = vadd.f32 0.4994258, %v1067_v22 }
 0x15e   : > { %1525 = vrot.lane.b32.xlu2 %v3034_v2, %s2631_s24  ;;  %v1293_v44 = vadd.f32 1.0, %v2250_v16  ;;  %v1057_v9 = vadd.f32 0.18741608, %v1056_v58 }
 0x15f   : > { %v1224_v46 = vadd.f32 0.014752088, %v1223_v40  ;;  %v1069_v54 = vmul.f32 %v1068_v50, %v2997_v48  ;;  %v1213_v56 = vadd.f32 0.0036580483, %v1212_v38 }
 0x160   : > { %v3043_v53 = vmul.f32 %v1293_v44, %v957_v43  ;;  %v1058_v8 = vmul.f32 %v1057_v9, %v2997_v48 }
 0x161   : > { %1501 = vrot.lane.b32.xlu0 %v3034_v2, %s2632_s29  ;;  %v1225_v57 = vmul.f32 %v1224_v46, %v3024_v52  ;;  %v1070_v25 = vadd.f32 1.0, %v1069_v54  ;;  %v1214_v5 = vmul.f32 %v1213_v56, %v3024_v52 }
 0x162   : > { %4079 = vst [vmem:[#allocation19_spill] sm:$0xff] %v3043_v53  ;;  %v877_v39 = vpop.f32.mrf.mxu0  ;;  %1503 = vrot.lane.b32.xlu1 %v3043_v53, %s2632_s29  ;;  %v1346_v62 = vrot.slane %v3043_v53, 7  ;;  %v1373_v6 = vrot.slane %v3043_v53, 1  ;;  %v1059_v16 = vadd.f32 1.1283791, %v1058_v8 }
 0x163   : > { %v1226_v63 = vadd.f32 0.112945676, %v1225_v57  ;;  %v878_v0 = vadd.f32 %v877_v39, %v579_v51  ;;  %2375 = vrcp.f32 %v1070_v25  ;;  %v1215_v19 = vadd.f32 0.05243302, %v1214_v5 }
 0x164   : > { %v900_v4 = vpop.f32.mrf.mxu1  ;;  %v3060_v61 = vsel %vm1349_vm8, %v1342_v3, %v1346_v62  ;;  %v1382_v23 = vsel %vm1376_vm9, %v1373_v6, %v1369_v14  ;;  %v1082_v40 = vand.u32 2147483648, %v1070_v25  ;;  %v3095_v47 = vsel %vm1376_vm9, %v1369_v14, %v1373_v6 }
 0x165   : > { %v1227_v11 = vmul.f32 %v1226_v63, %v3024_v52  ;;  %v901_v12 = vadd.f32 %v900_v4, %v878_v0  ;;  %v3082_v36 = vsel %vm2991_vm13, %v1382_v23, 0.0  ;;  %v1216_v48 = vmul.f32 %v1215_v19, %v3024_v52 }
 0x166   : > { %1426 = vrot.lane.b32.xlu2 %v3060_v61, %s2631_s24  ;;  %v923_v13 = vpop.f32.mrf.mxu2  ;;  %v1080_v46 = vand.u32 2147483647, %v1070_v25  ;;  %vm1076_vm5 = vweird.f32 %v1070_v25  ;;  %v1060_v39 = vmul.f32 %v1059_v16, %v2979_v34  ;;  %v1083_v63 = vor.u32 1.1754944e-38, %v1082_v40 }
 0x167   : > { %v1228_v15 = vadd.f32 0.4994258, %v1227_v11  ;;  %v924_v17 = vadd.f32 %v923_v13, %v901_v12  ;;  %v1217_v54 = vadd.f32 0.18741608, %v1216_v48 }
 0x168   : > { %vm1081_vm7 = vcmp.eq.f32.partialorder %v1080_v46, 8.507059e+37 }
 0x169   : > { %v946_v18 = vpop.f32.mrf.mxu3  ;;  %1527 = vrot.lane.b32.xlu0 %v3043_v53, %s2631_s24  ;;  %v1229_v29 = vmul.f32 %v1228_v15, %v3024_v52  ;;  %v2376_v32 = vpop.eup %2375  ;;  %v1218_v11 = vmul.f32 %v1217_v54, %v3024_v52 }
 0x16a   : > { %v3074_v30 = vadd.f32 %v946_v18, %v924_v17  ;;  %v880_v31 = vpop.f32.mrf.mxu0  ;;  %1399 = vrot.lane.b32.xlu1 %v3060_v61, %s2632_s29  ;;  %v1072_v49 = vmul.f32 %v2376_v32, %v1070_v25  ;;  %vm1077_vm4 = vweird.f32 %v2376_v32  ;;  %v1355_v25 = vsel %vm1349_vm8, %v1346_v62, %v1342_v3 }
 0x16b   : > { %v881_v24 = vadd.f32 %v880_v31, %v579_v51  ;;  %v3078_v1 = vadd.f32 1.0, %v1229_v29  ;;  %vm1078_vm6 = vmor %vm1076_vm5, %vm1077_vm4  ;;  %v3124_v23 = vsel %vm2970_vm10, %v1355_v25, 0.0  ;;  %v1219_v29 = vadd.f32 1.1283791, %v1218_v11 }
 0x16c   : > { %v903_v35 = vpop.f32.mrf.mxu1  ;;  %v3086_v37 = vmul.f32 0.70710677, %v3074_v30  ;;  %v1073_v22 = vsub.f32 1.0, %v1072_v49  ;;  %v958_v25 = vmul.f32 0.5, %v3006_v59 }
 0x16d   : > { %v904_v21 = vadd.f32 %v903_v35, %v881_v24  ;;  %2377 = vrcp.f32 %v3078_v1  ;;  %v1242_v3 = vand.u32 2147483648, %v3078_v1  ;;  %v954_v24 = vmul.f32 0.5, %v2966_v26 }
 0x16e   : > { %1611 = vrot.lane.b32.xlu2 %v3082_v36, %s2632_s29  ;;  %v926_v38 = vpop.f32.mrf.mxu2  ;;  %v1088_v43 = vmul.f32 %v3086_v37, %v3086_v37  ;;  %v1074_v50 = vmul.f32 %v2376_v32, %v1073_v22  ;;  %vm1236_vm12 = vweird.f32 %v3078_v1 }
 0x16f   : > { %v927_v44 = vadd.f32 %v926_v38, %v904_v21  ;;  %v1243_v40 = vor.u32 1.1754944e-38, %v1242_v3 }
 0x170   : > { %v3099_v56 = vmin.f32 %v1088_v43, 16.0  ;;  %v1075_v58 = vadd.f32 %v2376_v32, %v1074_v50 }
 0x171   : > { %v949_v51 = vpop.f32.mrf.mxu3  ;;  %1633 = vrot.lane.b32.xlu0 %v3095_v47, %s2631_s24 }
 0x172   : > { %v3101_v57 = vadd.f32 %v949_v51, %v927_v44  ;;  %1609 = vrot.lane.b32.xlu1 %v3095_v47, %s2632_s29  ;;  %v1090_v0 = vmul.f32 2.1237322e-06, %v3099_v56  ;;  %v1101_v4 = vmul.f32 3.8918573e-05, %v3099_v56  ;;  %v1079_v6 = vsel %vm1078_vm6, %v2376_v32, %v1075_v58 }
 0x173   : > { %v2378_v5 = vpop.eup %2377  ;;  %v1084_v34 = vsel %vm1081_vm7, %v1083_v63, %v1079_v6  ;;  %v1240_v32 = vand.u32 2147483647, %v3078_v1  ;;  %v1220_v44 = vmul.f32 %v1219_v29, %v3014_v7 }
 0x174   : > { %v3109_v9 = vmul.f32 0.70710677, %v3101_v57  ;;  %v1232_v12 = vmul.f32 %v2378_v5, %v3078_v1  ;;  %v1091_v13 = vadd.f32 0.00028619796, %v1090_v0  ;;  %v1085_v14 = vmul.f32 %v1084_v34, %v1060_v39 }
 0x175   : > { %v1102_v15 = vadd.f32 0.001143296, %v1101_v4  ;;  %vm1237_vm11 = vweird.f32 %v2378_v5  ;;  %vm1241_vm15 = vcmp.eq.f32.partialorder %v1240_v32, 8.507059e+37 }
 0x176   : > { %v1248_v17 = vmul.f32 %v3109_v9, %v3109_v9  ;;  %v1233_v18 = vsub.f32 1.0, %v1232_v12  ;;  %v1092_v19 = vmul.f32 %v1091_v13, %v3099_v56  ;;  %v2247_v8 = vclamps-f32 %v1085_v14, 1.0  ;;  %vm1238_vm14 = vmor %vm1236_vm12, %vm1237_vm11 }
 0x177   : > { %v1103_v52 = vmul.f32 %v1102_v15, %v3099_v56 }
 0x178   : > { %v3128_v62 = vmin.f32 %v1248_v17, 16.0  ;;  %v1234_v31 = vmul.f32 %v2378_v5, %v1233_v18  ;;  %v1290_v49 = vadd.f32 1.0, %v2247_v8  ;;  %v1093_v16 = vadd.f32 0.0036580483, %v1092_v19 }
 0x179   : > { %v1104_v35 = vadd.f32 0.014752088, %v1103_v52 }
 0x17a   : > { %v1250_v48 = vmul.f32 2.1237322e-06, %v3128_v62  ;;  %1397 = vrot.lane.b32.xlu1 %v3124_v23, %s2632_s29  ;;  %v1235_v21 = vadd.f32 %v2378_v5, %v1234_v31  ;;  %v1261_v22 = vmul.f32 3.8918573e-05, %v3128_v62  ;;  %v3137_v38 = vmul.f32 %v1290_v49, %v954_v24 }
 0x17b   : > { %v1105_v43 = vmul.f32 %v1104_v35, %v3099_v56  ;;  %v1094_v39 = vmul.f32 %v1093_v16, %v3099_v56 }
 0x17c   : > { %4080 = vst [vmem:[#allocation20_spill] sm:$0xff] %v3137_v38  ;;  %v1251_v26 = vadd.f32 0.00028619796, %v1250_v48  ;;  %v1239_v50 = vsel %vm1238_vm14, %v2378_v5, %v1235_v21  ;;  %v1262_v46 = vadd.f32 0.001143296, %v1261_v22  ;;  %1505 = vrot.lane.b32.xlu2 %v3137_v38, %s2632_s29  ;;  %v1343_v32 = vrot.slane %v3137_v38, 7 }
 0x17d   : > { %v1244_v51 = vsel %vm1241_vm15, %v1243_v40, %v1239_v50  ;;  %v1106_v54 = vadd.f32 0.112945676, %v1105_v43  ;;  %v1095_v11 = vadd.f32 0.05243302, %v1094_v39 }
 0x17e   : > { %v1252_v58 = vmul.f32 %v1251_v26, %v3128_v62  ;;  %v1245_v1 = vmul.f32 %v1244_v51, %v1220_v44  ;;  %v1263_v63 = vmul.f32 %v1262_v46, %v3128_v62  ;;  %v1370_v44 = vrot.slane %v3137_v38, 1 }
 0x17f   : > { %v1107_v0 = vmul.f32 %v1106_v54, %v3099_v56  ;;  %v1096_v19 = vmul.f32 %v1095_v11, %v3099_v56 }
 0x180   : > { %v2251_v4 = vclamps-f32 %v1245_v1, 1.0  ;;  %v1264_v6 = vadd.f32 0.014752088, %v1263_v63  ;;  %v1253_v5 = vadd.f32 0.0036580483, %v1252_v58 }
 0x181   : > { %v1108_v7 = vadd.f32 0.4994258, %v1107_v0  ;;  %v1097_v29 = vadd.f32 0.18741608, %v1096_v19  ;;  %v955_v19 = vmul.f32 0.5, %v3074_v30 }
 0x182   : > { %1424 = vrot.lane.b32.xlu1 %v3124_v23, %s2631_s24  ;;  %v1294_v34 = vadd.f32 1.0, %v2251_v4  ;;  %v1265_v12 = vmul.f32 %v1264_v6, %v3128_v62  ;;  %v1254_v18 = vmul.f32 %v1253_v5, %v3128_v62 }
 0x183   : > { %v1109_v13 = vmul.f32 %v1108_v7, %v3099_v56  ;;  %v1098_v21 = vmul.f32 %v1097_v29, %v3099_v56 }
 0x184   : > { %v3152_v14 = vmul.f32 %v1294_v34, %v958_v25  ;;  %v1266_v15 = vadd.f32 0.112945676, %v1265_v12  ;;  %v1255_v3 = vadd.f32 0.05243302, %v1254_v18 }
 0x185   : > { %v1110_v17 = vadd.f32 1.0, %v1109_v13  ;;  %v1099_v50 = vadd.f32 1.1283791, %v1098_v21 }
 0x186   : > { %4081 = vst [vmem:[#allocation21_spill] sm:$0xff] %v3152_v14  ;;  %v1267_v8 = vmul.f32 %v1266_v15, %v3128_v62  ;;  %1507 = vrot.lane.b32.xlu0 %v3152_v14, %s2632_s29  ;;  %1531 = vrot.lane.b32.xlu2 %v3152_v14, %s2631_s24  ;;  %v1347_v52 = vrot.slane %v3152_v14, 7  ;;  %v1256_v35 = vmul.f32 %v1255_v3, %v3128_v62  ;;  %v1374_v40 = vrot.slane %v3152_v14, 1 }
 0x187   : > { %2379 = vrcp.f32 %v1110_v17  ;;  %v1122_v43 = vand.u32 2147483648, %v1110_v17  ;;  %v1120_v46 = vand.u32 2147483647, %v1110_v17  ;;  %vm1116_vm1 = vweird.f32 %v1110_v17 }
 0x188   : > { %v1268_v59 = vadd.f32 0.4994258, %v1267_v8  ;;  %v3169_v48 = vsel %vm1349_vm8, %v1343_v32, %v1347_v52  ;;  %v1257_v26 = vadd.f32 0.18741608, %v1256_v35  ;;  %v3182_v58 = vsel %vm1376_vm9, %v1370_v44, %v1374_v40 }
 0x189   : > { %v1123_v1 = vor.u32 1.1754944e-38, %v1122_v43  ;;  %v1383_v0 = vsel %vm1376_vm9, %v1374_v40, %v1370_v44  ;;  %v1100_v4 = vmul.f32 %v1099_v50, %v3086_v37  ;;  %vm1121_vm3 = vcmp.eq.f32.partialorder %v1120_v46, 8.507059e+37 }
 0x18a   : > { %1635 = vrot.lane.b32.xlu1 %v3082_v36, %s2631_s24  ;;  %v1269_v31 = vmul.f32 %v1268_v59, %v3128_v62  ;;  %v1258_v39 = vmul.f32 %v1257_v26, %v3128_v62  ;;  %v3196_v11 = vsel %vm2991_vm13, %v1383_v0, 0.0 }
 0x18c   : > { %v1270_v24 = vadd.f32 1.0, %v1269_v31  ;;  %v1259_v12 = vadd.f32 1.1283791, %v1258_v39 }
 0x18d   : > { %v2380_v49 = vpop.eup %2379 }
 0x18e   : > { %v1112_v16 = vmul.f32 %v2380_v49, %v1110_v17  ;;  %2381 = vrcp.f32 %v1270_v24  ;;  %1430 = vrot.lane.b32.xlu0 %v3169_v48, %s2631_s24  ;;  %1403 = vrot.lane.b32.xlu2 %v3169_v48, %s2632_s29  ;;  %vm1117_vm0 = vweird.f32 %v2380_v49  ;;  %v1282_v62 = vand.u32 2147483648, %v1270_v24 }
 0x18f   : > { %vm1118_vm2 = vmor %vm1116_vm1, %vm1117_vm0  ;;  %v1280_v13 = vand.u32 2147483647, %v1270_v24  ;;  %v1356_v17 = vsel %vm1349_vm8, %v1347_v52, %v1343_v32  ;;  %vm1276_vm5 = vweird.f32 %v1270_v24  ;;  %v1260_v3 = vmul.f32 %v1259_v12, %v3109_v9 }
 0x190   : > { %v1113_v22 = vsub.f32 1.0, %v1112_v16  ;;  %v1283_v59 = vor.u32 1.1754944e-38, %v1282_v62  ;;  %v3206_v31 = vsel %vm2970_vm10, %v1356_v17, 0.0  ;;  %v959_v9 = vmul.f32 0.5, %v3101_v57 }
 0x191   : > { %vm1281_vm7 = vcmp.eq.f32.partialorder %v1280_v13, 8.507059e+37  ;;  %v3298_v12 = vand.u32 127, %v1312_v33  ;;  %v3303_v13 = vld [vmem:[#allocation8 + $0x8] sm:$0xff] }
 0x192   : > { %1529 = vrot.lane.b32.xlu1 %v3137_v38, %s2631_s24  ;;  %v1114_v56 = vmul.f32 %v2380_v49, %v1113_v22  ;;  %v4039_v17 = vperm.slane %v3303_v13, 1 }
 0x194   : > { %v2382_v51 = vpop.eup %2381  ;;  %v1115_v54 = vadd.f32 %v2380_v49, %v1114_v56 }
 0x195   : > { %v1272_v63 = vmul.f32 %v2382_v51, %v1270_v24  ;;  %vm1277_vm4 = vweird.f32 %v2382_v51 }
 0x196   : > { %v1119_v6 = vsel %vm1118_vm2, %v2380_v49, %v1115_v54  ;;  %1613 = vrot.lane.b32.xlu0 %v3182_v58, %s2632_s29  ;;  %1637 = vrot.lane.b32.xlu2 %v3182_v58, %s2631_s24  ;;  %vm1278_vm6 = vmor %vm1276_vm5, %vm1277_vm4 }
 0x197   : > { %v1124_v5 = vsel %vm1121_vm3, %v1123_v1, %v1119_v6  ;;  %v1273_v25 = vsub.f32 1.0, %v1272_v63 }
 0x198   : > { %v3192_v7 = vpop.permute.xlu2 %1499  ;;  %v1125_v34 = vmul.f32 %v1124_v5, %v1100_v4 }
 0x199   : > { %4082 = vst [vmem:[#allocation22_spill] sm:$0xff] %v3192_v7  ;;  %v1274_v37 = vmul.f32 %v2382_v51, %v1273_v25 }
 0x19a   : > { %1615 = vrot.lane.b32.xlu1 %v3196_v11, %s2632_s29  ;;  %v2248_v15 = vclamps-f32 %v1125_v34, 1.0 }
 0x19b   : > { %v1275_v18 = vadd.f32 %v2382_v51, %v1274_v37 }
 0x19c   : > { %v1291_v8 = vadd.f32 1.0, %v2248_v15 }
 0x19d   : > { %v1279_v29 = vsel %vm1278_vm6, %v2382_v51, %v1275_v18  ;;  %v4036_v18 = vperm.slane %v3303_v13, 0 }
 0x19e   : > { %v1284_v49 = vsel %vm1281_vm7, %v1283_v59, %v1279_v29  ;;  %1428 = vrot.lane.b32.xlu0 %v3206_v31, %s2631_s24  ;;  %1401 = vrot.lane.b32.xlu2 %v3206_v31, %s2632_s29  ;;  %v3214_v30 = vmul.f32 %v1291_v8, %v955_v19  ;;  %v4037_v19 = vperm.slane %v3303_v13, 3 }
 0x19f   : > { %v1285_v32 = vmul.f32 %v1284_v49, %v1260_v3  ;;  %v1466_v3 = vmul.f32 %v4039_v17, %v3060_v61  ;;  %v1558_v49 = vperm.slane %v3303_v13, 4 }
 0x1a0   : > { %v3212_v52 = vpop.permute.xlu2 %1605  ;;  %4083 = vst [vmem:[#allocation23_spill] sm:$0xff] %v3214_v30  ;;  %v1344_v40 = vrot.slane %v3214_v30, 7  ;;  %v1371_v46 = vrot.slane %v3214_v30, 1 }
 0x1a1   : > { %v2252_v24 = vclamps-f32 %v1285_v32, 1.0 }
 0x1a2   : > { %1509 = vrot.lane.b32.xlu1 %v3214_v30, %s2632_s29 }
 0x1a3   : > { %v1295_v35 = vadd.f32 1.0, %v2252_v24  ;;  %v4038_v24 = vperm.slane %v3303_v13, 5 }
 0x1a5   : > { %v3219_v21 = vmul.f32 %v1295_v35, %v959_v9 }
 0x1a6   : > { %1533 = vrot.lane.b32.xlu0 %v3214_v30, %s2631_s24  ;;  %v3231_v43 = vpop.permute.xlu0 %1521  ;;  %v3267_v39 = vpop.permute.xlu1 %1497 }
 0x1a7   : > { %4084 = vst [vmem:[#allocation24_spill] sm:$0xff] %v3219_v21  ;;  %1511 = vrot.lane.b32.xlu2 %v3219_v21, %s2632_s29  ;;  %v1348_v22 = vrot.slane %v3219_v21, 7  ;;  %v1375_v50 = vrot.slane %v3219_v21, 1 }
 0x1a8   : > { %v3223_v16 = vpop.permute.xlu2 %1420  ;;  %4086 = vst [vmem:[#allocation26_spill] sm:$0xff] %v3231_v43 }
 0x1a9   : > { %4085 = vst [vmem:[#allocation25_spill] sm:$0xff] %v3223_v16  ;;  %v1357_v57 = vsel %vm1349_vm8, %v1348_v22, %v1344_v40  ;;  %v3243_v44 = vsel %vm1349_vm8, %v1344_v40, %v1348_v22  ;;  %v1384_v51 = vsel %vm1376_vm9, %v1375_v50, %v1371_v46  ;;  %v3265_v1 = vsel %vm1376_vm9, %v1371_v46, %v1375_v50 }
 0x1aa   : > { %1535 = vrot.lane.b32.xlu1 %v3219_v21, %s2631_s24  ;;  %v3237_v26 = vsel %vm2970_vm10, %v1357_v57, 0.0  ;;  %v3259_v54 = vsel %vm2991_vm13, %v1384_v51, 0.0  ;;  %vm1411_vm8 = vcmp.lt.s32.totalorder %v3298_v12, 32  ;;  %vm1436_vm9 = vcmp.lt.s32.totalorder %v3298_v12, 96 }
 0x1ab   : > { %v1566_v22 = vmul.f32 %v1558_v49, %v3043_v53 }
 0x1ae   : > { %1405 = vrot.lane.b32.xlu0 %v3237_v26, %s2632_s29 }
 0x1af   : > { %1434 = vrot.lane.b32.xlu2 %v3243_v44, %s2631_s24 }
 0x1b0   : > { %v3248_v56 = vpop.permute.xlu2 %1631  ;;  %v3281_v41 = vpop.permute.xlu1 %1523 }
 0x1b1   : > { %4087 = vst [vmem:[#allocation27_spill] sm:$0xff] %v3248_v56 }
 0x1b2   : > { %1407 = vrot.lane.b32.xlu1 %v3243_v44, %s2632_s29 }
 0x1b3   : > { %v3253_v28 = vpop.permute.xlu0 %1395 }
 0x1b4   : > { %4088 = vst [vmem:[#allocation28_spill] sm:$0xff] %v3253_v28 }
 0x1b6   : > { %1619 = vrot.lane.b32.xlu0 %v3259_v54, %s2632_s29 }
 0x1b7   : > { %1617 = vrot.lane.b32.xlu2 %v3265_v1, %s2632_s29 }
 0x1b8   : > { %v3273_v63 = vpop.permute.xlu2 %1525  ;;  %v3291_v5 = vpop.permute.xlu1 %1629 }
 0x1b9   : > { %4089 = vst [vmem:[#allocation29_spill] sm:$0xff] %v3291_v5 }
 0x1ba   : > { %1432 = vrot.lane.b32.xlu1 %v3237_v26, %s2631_s24 }
 0x1bb   : > { %v3275_v42 = vpop.permute.xlu0 %1422 }
 0x1be   : > { %1639 = vrot.lane.b32.xlu0 %v3196_v11, %s2631_s24 }
 0x1bf   : > { %1643 = vrot.lane.b32.xlu2 %v3259_v54, %s2631_s24 }
 0x1c0   : > { %v3287_v4 = vpop.permute.xlu2 %1426 }
 0x1c2   : > { %1641 = vrot.lane.b32.xlu1 %v3265_v1, %s2631_s24 }
 0x1c3   : > { %v3285_v0 = vpop.permute.xlu0 %1393 }
 0x1c8   : > { %v3293_v25 = vpop.permute.xlu2 %1611 }
 0x1cb   : > { %v3289_v6 = vpop.permute.xlu0 %1607 }
 0x1d3   : > { %v3295_v62 = vpop.permute.xlu0 %1501 }
 0x1d4   : > { %v1504_v34 = vpop.permute.xlu1 %1503 }
 0x1d5   : > { %v1518_v33 = vsel %vm1411_vm8, %v3192_v7, %v1504_v34 }
 0x1d6   : > { %v3301_v37 = vpop.permute.xlu2 %1505  ;;  %v1554_v32 = vmul.f32 %v4037_v19, %v1518_v33  ;;  %v3343_v33 = vld [vmem:[#allocation8 + $0x10] sm:$0xff] }
 0x1d7   : > { %4090 = vst [vmem:[#allocation30_spill] sm:$0xff] %v3301_v37  ;;  %v3309_v15 = vsel %vm1411_vm8, %v3295_v62, %v3301_v37 }
 0x1d8   : > { %v1574_v57 = vadd.f32 %v1566_v22, %v1554_v32 }
 0x1db   : > { %v3329_v9 = vpop.permute.xlu0 %1527 }
 0x1dc   : > { %v1400_v8 = vpop.permute.xlu1 %1399 }
 0x1dd   : > { %v1417_v59 = vsel %vm1411_vm8, %v3253_v28, %v1400_v8  ;;  %v3375_v28 = vld [vmem:[#allocation8] sm:$0xff] }
 0x1de   : > { %v1454_v29 = vmul.f32 %v4036_v18, %v1417_v59  ;;  %v1459_v59 = vperm.slane %v3343_v33, 1  ;;  %v1457_v56 = vperm.slane %v3375_v28, 1 }
 0x1e0   : > { %v1474_v35 = vadd.f32 %v1466_v3, %v1454_v29  ;;  %v3333_v40 = vpop.permute.xlu2 %1531  ;;  %v1447_v3 = vperm.slane %v3343_v33, 0  ;;  %v1467_v32 = vmul.f32 %v1459_v59, %v3169_v48  ;;  %v3401_v7 = vmul.f32 %v1457_v56, %v2941_v60 }
 0x1e1   : > { %4091 = vst [vmem:[#allocation31_spill] sm:$0xff] %v3333_v40  ;;  %v1540_v61 = vsel %vm1436_vm9, %v3329_v9, %v3333_v40  ;;  %v4056_v60 = vperm.slane %v3343_v33, 6 }
 0x1e2   : > { %v1586_v50 = vmul.f32 %v4038_v24, %v1540_v61 }
 0x1e3   : > { %v3355_v24 = vpop.permute.xlu0 %1633 }
 0x1e4   : > { %v3341_v46 = vpop.permute.xlu1 %1609  ;;  %v1594_v51 = vadd.f32 %v1586_v50, %v1574_v57 }
 0x1e8   : > { %v3347_v29 = vpop.permute.xlu2 %1403 }
 0x1e9   : > { %4092 = vst [vmem:[#allocation32_spill] sm:$0xff] %v3347_v29  ;;  %v1415_v18 = vsel %vm1411_vm8, %v1400_v8, %v3347_v29  ;;  %v4050_v29 = vperm.slane %v3303_v13, 2 }
 0x1ea   : > { %v1455_v22 = vmul.f32 %v1447_v3, %v1415_v18  ;;  %v1463_v18 = vmul.f32 %v1459_v59, %v3206_v31  ;;  %v1557_v31 = vperm.slane %v3375_v28, 4 }
 0x1ec   : > { %v1398_v19 = vpop.permute.xlu1 %1397  ;;  %v3353_v61 = vadd.f32 %v1467_v32, %v1455_v22 }
 0x1f0   : > { %v3357_v57 = vpop.permute.xlu2 %1637 }
 0x1f1   : > { %4093 = vst [vmem:[#allocation33_spill] sm:$0xff] %v3357_v57 }
 0x1f4   : > { %v3359_v50 = vpop.permute.xlu1 %1424 }
 0x1f8   : > { %v1508_v17 = vpop.permute.xlu0 %1507  ;;  %v3361_v53 = vpop.permute.xlu2 %1401 }
 0x1f9   : > { %4094 = vst [vmem:[#allocation34_spill] sm:$0xff] %v3361_v53  ;;  %v3365_v37 = vsel %vm1411_vm8, %v1504_v34, %v1508_v17  ;;  %v1414_v48 = vsel %vm1411_vm8, %v1398_v19, %v3361_v53  ;;  %v1665_v34 = vperm.slane %v3375_v28, 7 }
 0x1fa   : > { %4095 = vst [vmem:[#allocation35_spill] sm:$0xff] %v3365_v37  ;;  %v1451_v8 = vmul.f32 %v1447_v3, %v1414_v48  ;;  %v1559_v37 = vperm.slane %v3343_v33, 4 }
 0x1fc   : > { %v3371_v32 = vpop.permute.xlu1 %1635  ;;  %v3373_v22 = vadd.f32 %v1463_v18, %v1451_v8  ;;  %v1666_v18 = vperm.slane %v3303_v13, 7 }
 0x1fd   : > { %4096 = vst [vmem:[#allocation36_spill] sm:$0xff] %v3371_v32  ;;  %v3397_v32 = vld [vmem:[#allocation8 + $0x18] sm:$0xff] }
 0x1fe   : > { %4097 = vst [vmem:[#allocation37_spill] sm:$0xff] %v3373_v22  ;;  %v1667_v22 = vperm.slane %v3343_v33, 7 }
 0x200   : > { %v1431_v40 = vpop.permute.xlu0 %1430 }
 0x201   : > { %v1440_v53 = vsel %vm1436_vm9, %v3287_v4, %v1431_v40  ;;  %v3384_v59 = vpop.permute.xlu2 %1511 }
 0x202   : > { %4098 = vst [vmem:[#allocation38_spill] sm:$0xff] %v3384_v59  ;;  %v1486_v3 = vmul.f32 %v4050_v29, %v1440_v53  ;;  %v3391_v48 = vsel %vm1411_vm8, %v1508_v17, %v3384_v59  ;;  %v3404_v53 = vmul.f32 %v1665_v34, %v2952_v10  ;;  %v3407_v17 = vmul.f32 %v1557_v31, %v2923_v45 }
 0x203   : > { %4099 = vst [vmem:[#allocation39_spill] sm:$0xff] %v3391_v48  ;;  %v3410_v29 = vmul.f32 %v1557_v31, %v2903_v20  ;;  %v3413_v48 = vmul.f32 %v1457_v56, %v2986_v27  ;;  %v3416_v59 = vmul.f32 %v1665_v34, %v3010_v55  ;;  %v1562_v10 = vmul.f32 %v1558_v49, %v3034_v2 }
 0x204   : > { %v3394_v8 = vpop.permute.xlu1 %1529  ;;  %v1494_v16 = vadd.f32 %v1486_v3, %v1474_v35  ;;  %v1670_v35 = vmul.f32 %v1666_v18, %v3095_v47  ;;  %v1560_v3 = vperm.slane %v3397_v32, 4  ;;  %v3426_v31 = vmul.f32 %v1666_v18, %v3082_v36 }
 0x205   : > { %v4101_v27 = vperm.slane %v3303_v13, 1  ;;  %v3433_v56 = vmul.f32 %v1559_v37, %v3137_v38  ;;  %v3436_v47 = vmul.f32 %v1667_v22, %v3196_v11  ;;  %v1460_v49 = vperm.slane %v3397_v32, 1 }
 0x206   : > { %v3418_v5 = vadd.f32 %v1594_v51, %v1494_v16  ;;  %v1671_v16 = vmul.f32 %v1667_v22, %v3182_v58  ;;  %v1668_v34 = vperm.slane %v3397_v32, 7  ;;  %v3450_v58 = vmul.f32 %v1559_v37, %v3152_v14 }
 0x207   : > { %v1462_v55 = vmul.f32 %v4101_v27, %v3124_v23  ;;  %v1517_v23 = vsel %vm1411_vm8, %v3267_v39, %v3295_v62  ;;  %v1577_v27 = vperm.slane %v3375_v28, 5  ;;  %v1416_v45 = vsel %vm1411_vm8, %v3285_v0, %v1398_v19 }
 0x208   : > { %4100 = vst [vmem:[#allocation40_spill] sm:$0xff] %v3418_v5  ;;  %v1614_v51 = vpop.permute.xlu0 %1613  ;;  %v4102_v38 = vperm.slane %v3343_v33, 2  ;;  %v3466_v37 = vmul.f32 %v1560_v3, %v3214_v30  ;;  %v4105_v2 = vperm.slane %v3303_v13, 3 }
 0x209   : > { %v1623_v36 = vsel %vm1411_vm8, %v3341_v46, %v1614_v51  ;;  %v3443_v18 = vpop.permute.xlu2 %1434 }
 0x20a   : > { %v1659_v11 = vmul.f32 %v4056_v60, %v1623_v36  ;;  %v1438_v22 = vsel %vm1436_vm9, %v1431_v40, %v3443_v18  ;;  %4103 = vst [vmem:[#allocation41_spill] sm:$0xff] %v3466_v37  ;;  %v1477_v36 = vperm.slane %v3375_v28, 2  ;;  %v1654_v60 = vperm.slane %v3303_v13, 6 }
 0x20b   : > { %v1487_v20 = vmul.f32 %v4102_v38, %v1438_v22  ;;  %v3471_v40 = vmul.f32 %v1560_v3, %v3219_v21  ;;  %v1550_v19 = vmul.f32 %v4105_v2, %v1517_v23  ;;  %v1625_v38 = vsel %vm1411_vm8, %v3212_v52, %v3341_v46 }
 0x20c   : > { %v3463_v62 = vpop.permute.xlu1 %1615  ;;  %v3473_v14 = vadd.f32 %v1671_v16, %v1659_v11  ;;  %v1539_v22 = vsel %vm1436_vm9, %v3273_v63, %v3394_v8  ;;  %v3489_v3 = vmul.f32 %v1460_v49, %v3243_v44  ;;  %v1672_v16 = vmul.f32 %v1668_v34, %v3265_v1  ;;  %v3498_v11 = vld [vmem:[#allocation8 + $0x28] ss:$0 sm:$0xff] }
 0x20d   : > { %v3486_v30 = vadd.f32 %v1487_v20, %v3353_v61  ;;  %v1541_v2 = vsel %vm1436_vm9, %v3231_v43, %v3273_v63  ;;  %v4106_v46 = vperm.slane %v3303_v13, 0  ;;  %4107 = vst [vmem:[#allocation43_spill] sm:$0xff] %v3498_v11  ;;  %v3501_v21 = vmul.f32 %v1460_v49, %v3237_v26 }
 0x20e   : > { %4104 = vst [vmem:[#allocation42_spill] sm:$0xff] %v3473_v14  ;;  %v1547_v20 = vperm.slane %v3343_v33, 3  ;;  %v1647_v44 = vsel %vm1436_vm9, %v3355_v24, %v3357_v57  ;;  %v3510_v61 = vmul.f32 %v1668_v34, %v3259_v54  ;;  %v1658_v63 = vmul.f32 %v1654_v60, %v1625_v38 }
 0x20f   : > { %v1450_v23 = vmul.f32 %v4106_v46, %v1416_v45  ;;  %v1626_v45 = vsel %vm1411_vm8, %v3289_v6, %v3293_v25  ;;  %v4108_v26 = vperm.slane %v3303_v13, 5  ;;  %v3520_v14 = vmul.f32 %v1577_v27, %v1541_v2 }
 0x210   : > { %v3518_v46 = vpop.permute.xlu0 %1428  ;;  %v1442_v1 = vsel %vm1436_vm9, %v3275_v42, %v3287_v4  ;;  %v1570_v54 = vadd.f32 %v1562_v10, %v1550_v19  ;;  %v1690_v5 = vmul.f32 %v3498_v11, %v1647_v44  ;;  %v4109_v2 = vperm.slane %v3303_v13, 2  ;;  %v2363_v11 = vld [vmem:[#allocation8 + $0x20] ss:$0 sm:$0xff] }
 0x211   : > { %v1582_v49 = vmul.f32 %v4108_v26, %v1539_v22  ;;  %v1439_v34 = vsel %vm1436_vm9, %v3359_v50, %v3518_v46  ;;  %v1618_v57 = vpop.permute.xlu2 %1617  ;;  %v1470_v38 = vadd.f32 %v1462_v55, %v1450_v23  ;;  %v3531_v22 = vld [vmem:[#allocation10] sm:$0xf]  ;;  %v1662_v43 = vmul.f32 %v1654_v60, %v1626_v45  ;;  %v4111_v60 = vld [vmem:[#allocation29_spill] sm:$0xff]  ;;  %v4113_v45 = vld [vmem:[#allocation38_spill] sm:$0xff] }
 0x212   : > { %v1482_v26 = vmul.f32 %v4109_v2, %v1439_v34  ;;  %v1621_v37 = vsel %vm1411_vm8, %v1614_v51, %v1618_v57  ;;  %v1551_v4 = vmul.f32 %v1547_v20, %v3309_v15  ;;  %v1542_v10 = vsel %vm1436_vm9, %v3281_v41, %v3329_v9  ;;  %v4112_v51 = vld [vmem:[#allocation22_spill] sm:$0xff] }
 0x213   : > { %v4110_v55 = vperm.slane %v3397_v32, 6  ;;  %v1678_v44 = vadd.f32 %v1670_v35, %v1658_v63  ;;  %v1545_v13 = vperm.slane %v3375_v28, 3  ;;  %v1590_v34 = vadd.f32 %v1582_v49, %v1570_v54  ;;  %v4114_v63 = vld [vmem:[#allocation25_spill] sm:$0xff] }
 0x214   : > { %v3544_v23 = vpop.permute.xlu1 %1509  ;;  %v1490_v2 = vadd.f32 %v1482_v26, %v1470_v38  ;;  %v1649_v15 = vsel %vm1436_vm9, %v4111_v60, %v3355_v24  ;;  %v1520_v9 = vsel %vm1411_vm8, %v4113_v45, %v4112_v51  ;;  %v1441_v49 = vsel %vm1436_vm9, %v4114_v63, %v3359_v50  ;;  %v4115_v60 = vld [vmem:[#allocation35_spill] sm:$0xff] }
 0x215   : > { %v1660_v19 = vmul.f32 %v4110_v55, %v1621_v37  ;;  %v1698_v35 = vadd.f32 %v1690_v5, %v1678_v44  ;;  %v1579_v38 = vperm.slane %v3343_v33, 5  ;;  %v3563_v26 = vmul.f32 %v1477_v36, %v1442_v1 }
 0x216   : > { %v1598_v54 = vadd.f32 %v1590_v34, %v1490_v2  ;;  %v3566_v24 = vadd.f32 %v3426_v31, %v1662_v43  ;;  %v1555_v51 = vmul.f32 %v1547_v20, %v4115_v60  ;;  %v4064_v45 = vperm.slane %v3397_v32, 3  ;;  %v4119_v60 = vld [vmem:[#allocation39_spill] sm:$0xff] }
 0x217   : > { %v3556_v55 = vadd.f32 %v1672_v16, %v1660_v19  ;;  %v1571_v16 = vadd.f32 %v3433_v56, %v1551_v4  ;;  %v1585_v5 = vmul.f32 %v1577_v27, %v1542_v10  ;;  %v1553_v19 = vmul.f32 %v1545_v13, %v1520_v9  ;;  %v4117_v4 = vld [vmem:[#allocation36_spill] sm:$0xff]  ;;  %v4118_v10 = vld [vmem:[#allocation27_spill] sm:$0xff] }
 0x218   : > { %v1706_v44 = vadd.f32 %v1698_v35, %v1598_v54  ;;  %v3571_v37 = vpop.permute.xlu0 %1533  ;;  %v1689_v50 = vmul.f32 %v2363_v11, %v1649_v15  ;;  %v1481_v34 = vmul.f32 %v1477_v36, %v1441_v49  ;;  %v1480_v2 = vperm.slane %v3397_v32, 2 }
 0x219   : > { %v1537_v43 = vsel %vm1436_vm9, %v3394_v8, %v3571_v37  ;;  %v4116_v31 = vperm.slane %v3531_v22, 1  ;;  %v1624_v56 = vsel %vm1411_vm8, %v3293_v25, %v3463_v62  ;;  %v1519_v36 = vsel %vm1411_vm8, %v3544_v23, %v3267_v39 }
 0x21a   : > { %v1583_v27 = vmul.f32 %v1579_v38, %v1537_v43  ;;  %v1575_v1 = vadd.f32 %v3450_v58, %v1555_v51  ;;  %v1650_v8 = vsel %vm1436_vm9, %v4118_v10, %v4117_v4  ;;  %v1556_v15 = vmul.f32 %v4064_v45, %v4119_v60 }
 0x21b   : > { %v3580_v20 = vadd.f32 %v4116_v31, %v1706_v44  ;;  %v1653_v9 = vperm.slane %v3375_v28, 6  ;;  %v1573_v35 = vadd.f32 %v3407_v17, %v1553_v19  ;;  %v1627_v39 = vsel %vm1411_vm8, %v1618_v57, %v3212_v52  ;;  %v4121_v31 = vld [vmem:[#allocation31_spill] sm:$0xff] }
 0x21c   : > { %v1536_v25 = vpop.permute.xlu1 %1535  ;;  %v3606_v58 = vadd.f32 %v1583_v27, %v1571_v16  ;;  %v1444_v54 = vsel %vm1436_vm9, %v3443_v18, %v3275_v42  ;;  %v4120_v51 = vperm.slane %v3343_v33, 6  ;;  %v1549_v43 = vmul.f32 %v1545_v13, %v1519_v36 }
 0x21d   : > { %v3601_v49 = vmul.f32 0.70710677, %v3580_v20  ;;  %v1538_v17 = vsel %vm1436_vm9, %v4121_v31, %v1536_v25  ;;  %v1445_v52 = vperm.slane %v3375_v28, 0  ;;  %v1448_v57 = vperm.slane %v3397_v32, 0 }
 0x21e   : > { %v1663_v44 = vmul.f32 %v4120_v51, %v1624_v56  ;;  %v1587_v16 = vmul.f32 %v1579_v38, %v1538_v17  ;;  %v3621_v27 = vmul.f32 %v2363_v11, %v1650_v8  ;;  %v1576_v42 = vadd.f32 %v3471_v40, %v1556_v15  ;;  %v4122_v38 = vld [vmem:[#allocation34_spill] sm:$0xff] }
 0x21f   : > { %v1787_v19 = vmul.f32 %v3601_v49, %v3601_v49  ;;  %v1657_v18 = vmul.f32 %v1653_v9, %v1627_v39  ;;  %v1580_v13 = vperm.slane %v3397_v32, 5  ;;  %v1593_v56 = vadd.f32 %v1585_v5, %v1573_v35  ;;  %v3643_v35 = vpop.permute.xlu2 %1643 }
 0x220   : > { %v1488_v36 = vmul.f32 %v1480_v2, %v1444_v54  ;;  %v1406_v51 = vpop.permute.xlu0 %1405  ;;  %v1595_v31 = vadd.f32 %v1587_v16, %v1575_v1  ;;  %v3632_v45 = vadd.f32 %v3436_v47, %v1663_v44  ;;  %v1569_v11 = vadd.f32 %v3410_v29, %v1549_v43 }
 0x221   : > { %v3629_v60 = vmin.f32 %v1787_v19, 16.0  ;;  %v1412_v40 = vsel %vm1411_vm8, %v4122_v38, %v1406_v51  ;;  %v1418_v5 = vsel %vm1411_vm8, %v1406_v51, %v3285_v0  ;;  %v1677_v47 = vadd.f32 %v3404_v53, %v1657_v18  ;;  %v3658_v53 = vld [vmem:[#allocation8 + $0x38] ss:$0 sm:$0xff]  ;;  %v4124_v18 = vld [vmem:[#allocation28_spill] sm:$0xff] }
 0x222   : > { %v1449_v1 = vmul.f32 %v1445_v52, %v1418_v5  ;;  %v1452_v39 = vmul.f32 %v1448_v57, %v1412_v40  ;;  %v1715_v29 = vperm.slane %v3531_v22, 0  ;;  %v1544_v54 = vsel %vm1436_vm9, %v1536_v25, %v3281_v41  ;;  %v4123_v25 = vld [vmem:[#allocation32_spill] sm:$0xff]  ;;  %v4125_v40 = vld [vmem:[#allocation30_spill] sm:$0xff] }
 0x223   : > { %v1789_v8 = vmul.f32 2.1237322e-06, %v3629_v60  ;;  %v1800_v15 = vmul.f32 3.8918573e-05, %v3629_v60  ;;  %v3651_v44 = vadd.f32 %v1595_v31, %v3486_v30  ;;  %v1589_v51 = vadd.f32 %v3520_v14, %v1569_v11 }
 0x224   : > { %v1408_v0 = vpop.permute.xlu1 %1407  ;;  %v1469_v19 = vadd.f32 %v3413_v48, %v1449_v1  ;;  %v3655_v16 = vadd.f32 %v3501_v21, %v1452_v39  ;;  %v1652_v41 = vsel %vm1436_vm9, %v3643_v35, %v4118_v10  ;;  %v1697_v38 = vadd.f32 %v1689_v50, %v1677_v47 }
 0x225   : > { %v1790_v43 = vadd.f32 0.00028619796, %v1789_v8  ;;  %v1801_v17 = vadd.f32 0.001143296, %v1800_v15  ;;  %v1413_v30 = vsel %vm1411_vm8, %v4123_v25, %v1408_v0  ;;  %v1419_v48 = vsel %vm1411_vm8, %v1408_v0, %v4124_v18 }
 0x226   : > { %v1489_v14 = vadd.f32 %v1481_v34, %v1469_v19  ;;  %v1453_v11 = vmul.f32 %v1445_v52, %v1419_v48  ;;  %v1513_v10 = vsel %vm1411_vm8, %v4125_v40, %v3544_v23  ;;  %v1588_v5 = vmul.f32 %v1580_v13, %v1544_v54 }
 0x227   : > { %v1791_v21 = vmul.f32 %v1790_v43, %v3629_v60  ;;  %v1802_v31 = vmul.f32 %v1801_v17, %v3629_v60  ;;  %v1456_v8 = vmul.f32 %v1448_v57, %v1413_v30  ;;  %v1696_v17 = vmul.f32 %v3658_v53, %v1652_v41 }
 0x228   : > { %v1597_v39 = vadd.f32 %v1589_v51, %v1489_v14  ;;  %v1620_v0 = vpop.permute.xlu0 %1619  ;;  %v1473_v43 = vadd.f32 %v3401_v7, %v1453_v11  ;;  %v1596_v54 = vadd.f32 %v1588_v5, %v1576_v42  ;;  %v4126_v19 = vperm.slane %v3397_v32, 6 }
 0x229   : > { %v1792_v15 = vadd.f32 0.0036580483, %v1791_v21  ;;  %v1803_v1 = vadd.f32 0.014752088, %v1802_v31  ;;  %v1622_v50 = vsel %vm1411_vm8, %v3463_v62, %v1620_v0  ;;  %v1628_v23 = vsel %vm1411_vm8, %v1620_v0, %v3289_v6 }
 0x22a   : > { %v1476_v34 = vadd.f32 %v3489_v3, %v1456_v8  ;;  %v1705_v47 = vadd.f32 %v1697_v38, %v1597_v39  ;;  %v1661_v7 = vmul.f32 %v1653_v9, %v1628_v23  ;;  %v1664_v51 = vmul.f32 %v4126_v19, %v1622_v50  ;;  %v4129_v8 = vld [vmem:[#allocation26_spill] sm:$0xff]  ;;  %v4131_v23 = vld [vmem:[#allocation41_spill] sm:$0xff] }
 0x22b   : > { %v1793_v52 = vmul.f32 %v1792_v15, %v3629_v60  ;;  %v1804_v57 = vmul.f32 %v1803_v1, %v3629_v60  ;;  %v1493_v62 = vadd.f32 %v3563_v26, %v1473_v43  ;;  %v4127_v21 = vperm.slane %v3397_v32, 3 }
 0x22c   : > { %v1496_v41 = vadd.f32 %v1488_v36, %v1476_v34  ;;  %v1433_v25 = vpop.permute.xlu1 %1432  ;;  %v3696_v3 = vadd.f32 %v1715_v29, %v1705_v47  ;;  %v1681_v18 = vadd.f32 %v3416_v59, %v1661_v7  ;;  %v1684_v48 = vadd.f32 %v3510_v61, %v1664_v51  ;;  %v3711_v61 = vld [vmem:[#allocation8 + $0x30] ss:$0 sm:$0xff] }
 0x22d   : > { %v1794_v30 = vadd.f32 0.05243302, %v1793_v52  ;;  %v1805_v6 = vadd.f32 0.112945676, %v1804_v57  ;;  %v1601_v28 = vadd.f32 %v1593_v56, %v1493_v62  ;;  %v1437_v42 = vsel %vm1436_vm9, %v3518_v46, %v1433_v25  ;;  %v4132_v57 = vld [vmem:[#allocation37_spill] sm:$0xff] }
 0x22e   : > { %v1604_v9 = vadd.f32 %v1596_v54, %v1496_v41  ;;  %v1552_v31 = vmul.f32 %v4127_v21, %v1513_v10  ;;  %v3708_v14 = vmul.f32 0.70710677, %v3696_v3  ;;  %v1701_v59 = vadd.f32 %v3621_v27, %v1681_v18 }
 0x22f   : > { %v1795_v26 = vmul.f32 %v1794_v30, %v3629_v60  ;;  %v1806_v36 = vmul.f32 %v1805_v6, %v3629_v60  ;;  %v1704_v11 = vadd.f32 %v1696_v17, %v1684_v48  ;;  %v1443_v56 = vsel %vm1436_vm9, %v1433_v25, %v4114_v63 }
 0x230   : > { %v4128_v46 = vperm.slane %v3343_v33, 2  ;;  %v1543_v10 = vsel %vm1436_vm9, %v3571_v37, %v4129_v8  ;;  %v1747_v27 = vmul.f32 %v3708_v14, %v3708_v14  ;;  %v1640_v15 = vpop.permute.xlu0 %1639  ;;  %v1709_v1 = vadd.f32 %v1701_v59, %v1601_v28  ;;  %v4130_v37 = vld [vmem:[#allocation43_spill] sm:$0xff] }
 0x231   : > { %v1796_v40 = vadd.f32 0.18741608, %v1795_v26  ;;  %v1807_v5 = vadd.f32 0.4994258, %v1806_v36  ;;  %v3724_v39 = vadd.f32 %v1704_v11, %v1604_v9  ;;  %v1646_v63 = vsel %vm1436_vm9, %v1640_v15, %v3643_v35 }
 0x232   : > { %v1483_v38 = vmul.f32 %v4128_v46, %v1437_v42  ;;  %v1648_v33 = vsel %vm1436_vm9, %v4117_v4, %v1640_v15  ;;  %v3733_v43 = vmin.f32 %v1747_v27, 16.0  ;;  %v1484_v50 = vmul.f32 %v1480_v2, %v1443_v56 }
 0x233   : > { %v1808_v0 = vmul.f32 %v1807_v5, %v3629_v60  ;;  %v1694_v17 = vmul.f32 %v4130_v37, %v1648_v33  ;;  %v1572_v34 = vadd.f32 %v4131_v23, %v1552_v31  ;;  %v3741_v52 = vadd.f32 %v1715_v29, %v1709_v1 }
 0x234   : > { %v1695_v35 = vmul.f32 %v3711_v61, %v1646_v63  ;;  %v1491_v47 = vadd.f32 %v1483_v38, %v4132_v57  ;;  %v1797_v4 = vmul.f32 %v1796_v40, %v3629_v60  ;;  %v1749_v54 = vmul.f32 2.1237322e-06, %v3733_v43 }
 0x235   : > { %v3746_v7 = vadd.f32 1.0, %v1808_v0  ;;  %v1702_v19 = vadd.f32 %v1694_v17, %v3566_v24  ;;  %v1584_v2 = vmul.f32 %v1580_v13, %v1543_v10  ;;  %v1760_v51 = vmul.f32 3.8918573e-05, %v3733_v43  ;;  %v4133_v13 = vld [vmem:[#allocation40_spill] sm:$0xff] }
 0x236   : > { %v3754_v29 = vmul.f32 0.70710677, %v3741_v52  ;;  %v1703_v62 = vadd.f32 %v1695_v35, %v3632_v45  ;;  %v1717_v60 = vperm.slane %v3531_v22, 2  ;;  %v1492_v41 = vadd.f32 %v1484_v50, %v3655_v16  ;;  %v1642_v35 = vpop.permute.xlu1 %1641 }
 0x237   : > { %2383 = vrcp.f32 %v3746_v7  ;;  %v1592_v25 = vadd.f32 %v1584_v2, %v1572_v34  ;;  %v1750_v30 = vadd.f32 0.00028619796, %v1749_v54  ;;  %v1761_v6 = vadd.f32 0.001143296, %v1760_v51 }
 0x238   : > { %v1907_v32 = vmul.f32 %v3754_v29, %v3754_v29  ;;  %v1798_v24 = vadd.f32 1.1283791, %v1797_v4  ;;  %v1710_v18 = vadd.f32 %v1702_v19, %v4133_v13  ;;  %v1711_v48 = vadd.f32 %v1703_v62, %v3651_v44 }
 0x239   : > { %v3765_v28 = vadd.f32 %v3606_v58, %v1491_v47  ;;  %v1819_v45 = vand.u32 2147483647, %v3746_v7  ;;  %v1751_v9 = vmul.f32 %v1750_v30, %v3733_v43  ;;  %v1762_v16 = vmul.f32 %v1761_v6, %v3733_v43  ;;  %v4137_v30 = vld [vmem:[#allocation33_spill] sm:$0xff] }
 0x23a   : > { %v3770_v42 = vmin.f32 %v1907_v32, 16.0  ;;  %v1821_v26 = vand.u32 2147483648, %v3746_v7  ;;  %v4134_v36 = vperm.slane %v3531_v22, 1  ;;  %v3779_v44 = vadd.f32 %v1717_v60, %v1711_v48 }
 0x23b   : > { %v3781_v58 = vadd.f32 %v1592_v25, %v1492_v41  ;;  %v1752_v31 = vadd.f32 0.0036580483, %v1751_v9  ;;  %v1763_v59 = vadd.f32 0.014752088, %v1762_v16  ;;  %v1799_v46 = vmul.f32 %v1798_v24, %v3601_v49 }
 0x23c   : > { %v3775_v21 = vadd.f32 %v4134_v36, %v1710_v18  ;;  %v1909_v11 = vmul.f32 2.1237322e-06, %v3770_v42  ;;  %v1920_v38 = vmul.f32 3.8918573e-05, %v3770_v42  ;;  %vm3790_vm10 = vcmp.eq.f32.partialorder %v1819_v45, 8.507059e+37 }
 0x23d   : > { %v2384_v56 = vpop.eup %2383  ;;  %v1753_v10 = vmul.f32 %v1752_v31, %v3733_v43  ;;  %v1764_v27 = vmul.f32 %v1763_v59, %v3733_v43  ;;  %v3797_v63 = vmul.f32 0.70710677, %v3779_v44  ;;  %v1822_v0 = vor.u32 1.1754944e-38, %v1821_v26 }
 0x23e   : > { %v3787_v40 = vmul.f32 0.70710677, %v3775_v21  ;;  %v1811_v5 = vmul.f32 %v2384_v56, %v3746_v7  ;;  %v1910_v15 = vadd.f32 0.00028619796, %v1909_v11  ;;  %v1921_v1 = vadd.f32 0.001143296, %v1920_v38 }
 0x23f   : > { %v1754_v37 = vadd.f32 0.05243302, %v1753_v10  ;;  %v1765_v17 = vadd.f32 0.112945676, %v1764_v27  ;;  %vm1816_vm13 = vweird.f32 %v2384_v56  ;;  %v1987_v54 = vmul.f32 %v3797_v63, %v3797_v63 }
 0x240   : > { %v1947_v49 = vmul.f32 %v3787_v40, %v3787_v40  ;;  %v1812_v33 = vsub.f32 1.0, %v1811_v5  ;;  %v1911_v50 = vmul.f32 %v1910_v15, %v3770_v42  ;;  %v1922_v23 = vmul.f32 %v1921_v1, %v3770_v42  ;;  %v4138_v5 = vld [vmem:[#allocation29_spill] sm:$0xff] }
 0x241   : > { %v1755_v47 = vmul.f32 %v1754_v37, %v3733_v43  ;;  %v1766_v4 = vmul.f32 %v1765_v17, %v3733_v43  ;;  %vm1815_vm11 = vweird.f32 %v3746_v7  ;;  %v1645_v6 = vsel %vm1436_vm9, %v4137_v30, %v1642_v35 }
 0x242   : > { %v3803_v34 = vmin.f32 %v1947_v49, 16.0  ;;  %v1813_v57 = vmul.f32 %v2384_v56, %v1812_v33  ;;  %v1912_v19 = vadd.f32 0.0036580483, %v1911_v50  ;;  %v1923_v2 = vadd.f32 0.014752088, %v1922_v23  ;;  %vm1817_vm12 = vmor %vm1815_vm11, %vm1816_vm13  ;;  %v4139_v33 = vld [vmem:[#allocation42_spill] sm:$0xff] }
 0x243   : > { %v1767_v41 = vadd.f32 0.4994258, %v1766_v4  ;;  %v1756_v32 = vadd.f32 0.18741608, %v1755_v47  ;;  %v3819_v9 = vmin.f32 %v1987_v54, 16.0  ;;  %v1691_v31 = vmul.f32 %v3711_v61, %v1645_v6 }
 0x244   : > { %v1949_v51 = vmul.f32 2.1237322e-06, %v3803_v34  ;;  %v1814_v62 = vadd.f32 %v2384_v56, %v1813_v57  ;;  %v1960_v25 = vmul.f32 3.8918573e-05, %v3803_v34  ;;  %v1913_v24 = vmul.f32 %v1912_v19, %v3770_v42 }
 0x245   : > { %v1924_v13 = vmul.f32 %v1923_v2, %v3770_v42  ;;  %v1768_v48 = vmul.f32 %v1767_v41, %v3733_v43  ;;  %v1757_v10 = vmul.f32 %v1756_v32, %v3733_v43  ;;  %v1989_v61 = vmul.f32 2.1237322e-06, %v3819_v9 }
 0x246   : > { %v1950_v7 = vadd.f32 0.00028619796, %v1949_v51  ;;  %v1818_v18 = vsel %vm1817_vm12, %v2384_v56, %v1814_v62  ;;  %v1961_v45 = vadd.f32 0.001143296, %v1960_v25  ;;  %v1651_v56 = vsel %vm1436_vm9, %v1642_v35, %v4138_v5  ;;  %v4140_v51 = vld [vmem:[#allocation18_spill] sm:$0xff] }
 0x247   : > { %v1823_v16 = vsel %vm3790_vm10, %v1822_v0, %v1818_v18  ;;  %v1925_v26 = vadd.f32 0.112945676, %v1924_v13  ;;  %v3825_v11 = vadd.f32 1.0, %v1768_v48  ;;  %v1914_v27 = vadd.f32 0.05243302, %v1913_v24 }
 0x248   : > { %v1951_v36 = vmul.f32 %v1950_v7, %v3803_v34  ;;  %v1824_v59 = vmul.f32 %v1823_v16, %v1799_v46  ;;  %v1962_v38 = vmul.f32 %v1961_v45, %v3803_v34  ;;  %v1692_v49 = vmul.f32 %v3658_v53, %v1651_v56 }
 0x249   : > { %v1926_v8 = vmul.f32 %v1925_v26, %v3770_v42  ;;  %2385 = vrcp.f32 %v3825_v11  ;;  %v1699_v0 = vadd.f32 %v1691_v31, %v4139_v33  ;;  %v1732_v12 = vmul.f32 0.5, %v3580_v20 }
 0x24a   : > { %v1952_v15 = vadd.f32 0.0036580483, %v1951_v36  ;;  %v2254_v1 = vclamps-f32 %v1824_v59, 1.0  ;;  %v1963_v43 = vadd.f32 0.014752088, %v1962_v38  ;;  %v1915_v23 = vmul.f32 %v1914_v27, %v3770_v42 }
 0x24b   : > { %v1927_v17 = vadd.f32 0.4994258, %v1926_v8  ;;  %v1758_v50 = vadd.f32 1.1283791, %v1757_v10  ;;  %v1990_v4 = vadd.f32 0.00028619796, %v1989_v61  ;;  %v1700_v19 = vadd.f32 %v1692_v49, %v3556_v55 }
 0x24c   : > { %v1953_v46 = vmul.f32 %v1952_v15, %v3803_v34  ;;  %v2068_v37 = vadd.f32 1.0, %v2254_v1  ;;  %v1964_v47 = vmul.f32 %v1963_v43, %v3803_v34  ;;  %v2000_v53 = vmul.f32 3.8918573e-05, %v3819_v9 }
 0x24d   : > { %v1928_v57 = vmul.f32 %v1927_v17, %v3770_v42  ;;  %v1707_v20 = vadd.f32 %v1699_v0, %v3765_v28  ;;  %v1991_v30 = vmul.f32 %v1990_v4, %v3819_v9  ;;  %v1916_v32 = vadd.f32 0.18741608, %v1915_v23 }
 0x24e   : > { %v2076_v35 = vmul.f32 %v2068_v37, %v1732_v12  ;;  %v1954_v54 = vadd.f32 0.05243302, %v1953_v46  ;;  %v1965_v25 = vadd.f32 0.112945676, %v1964_v47  ;;  %v1718_v24 = vperm.slane %v3531_v22, 3 }
 0x24f   : > { %v2386_v2 = vpop.eup %2385  ;;  %v3846_v41 = vadd.f32 1.0, %v1928_v57  ;;  %v3857_v55 = vmul.f32 0.5, %v3696_v3  ;;  %v1759_v28 = vmul.f32 %v1758_v50, %v3708_v14  ;;  %v3861_v13 = vmul.f32 0.5, %v3741_v52 }
 0x250   : > { %v2084_v62 = vadd.f32 %v2076_v35, %v4140_v51  ;;  %v1771_v6 = vmul.f32 %v2386_v2, %v3825_v11  ;;  %v1779_v18 = vand.u32 2147483647, %v3825_v11  ;;  %v1781_v48 = vand.u32 2147483648, %v3825_v11 }
 0x251   : > { %2387 = vrcp.f32 %v3846_v41  ;;  %v1966_v45 = vmul.f32 %v1965_v25, %v3803_v34  ;;  %v1955_v16 = vmul.f32 %v1954_v54, %v3803_v34  ;;  %v1992_v26 = vadd.f32 0.0036580483, %v1991_v30 }
 0x252   : > { %2092 = vst [vmem:[%s3853_s12 + $0x8] sm:$0xff] %v2084_v62  ;;  %v1772_v7 = vsub.f32 1.0, %v1771_v6  ;;  %v2001_v36 = vadd.f32 0.001143296, %v2000_v53  ;;  %v1708_v3 = vadd.f32 %v1700_v19, %v3781_v58  ;;  %vm1776_vm14 = vweird.f32 %v2386_v2 }
 0x253   : > { %v1917_v14 = vmul.f32 %v1916_v32, %v3770_v42  ;;  %v1967_v52 = vadd.f32 0.4994258, %v1966_v45  ;;  %v3873_v38 = vadd.f32 %v1717_v60, %v1707_v20  ;;  %v3878_v56 = vadd.f32 %v1718_v24, %v3724_v39  ;;  %v4143_v45 = vld [vmem:[#allocation16_spill] sm:$0xff] }
 0x254   : > { %v1773_v31 = vmul.f32 %v2386_v2, %v1772_v7  ;;  %v2002_v59 = vmul.f32 %v2001_v36, %v3819_v9  ;;  %v3875_v5 = vadd.f32 %v1718_v24, %v1708_v3  ;;  %vm1775_vm15 = vweird.f32 %v3825_v11 }
 0x255   : > { %vm1780_vm0 = vcmp.eq.f32.partialorder %v1779_v18, 8.507059e+37  ;;  %v1968_v58 = vmul.f32 %v1967_v52, %v3803_v34  ;;  %vm1777_vm1 = vmor %vm1775_vm15, %vm1776_vm14  ;;  %v1782_v42 = vor.u32 1.1754944e-38, %v1781_v48  ;;  %v1956_v8 = vadd.f32 0.18741608, %v1955_v16 }
 0x256   : > { %v1774_v10 = vadd.f32 %v2386_v2, %v1773_v31  ;;  %v1993_v15 = vmul.f32 %v1992_v26, %v3819_v9  ;;  %v2003_v22 = vadd.f32 0.014752088, %v2002_v59  ;;  %v1918_v1 = vadd.f32 1.1283791, %v1917_v14 }
 0x257   : > { %v2388_v27 = vpop.eup %2387  ;;  %v3884_v46 = vadd.f32 1.0, %v1968_v58  ;;  %v1939_v49 = vand.u32 2147483647, %v3846_v41  ;;  %v3889_v33 = vmul.f32 0.70710677, %v3873_v38  ;;  %v1941_v37 = vand.u32 2147483648, %v3846_v41 }
 0x258   : > { %v1778_v60 = vsel %vm1777_vm1, %v2386_v2, %v1774_v10  ;;  %v1931_v61 = vmul.f32 %v2388_v27, %v3846_v41  ;;  %v2004_v11 = vmul.f32 %v2003_v22, %v3819_v9  ;;  %vm1936_vm2 = vweird.f32 %v2388_v27 }
 0x259   : > { %v1783_v39 = vsel %vm1780_vm0, %v1782_v42, %v1778_v60  ;;  %2389 = vrcp.f32 %v3884_v46  ;;  %v1957_v17 = vmul.f32 %v1956_v8, %v3803_v34  ;;  %v1994_v43 = vadd.f32 0.05243302, %v1993_v15 }
 0x25a   : > { %v1784_v0 = vmul.f32 %v1783_v39, %v1759_v28  ;;  %v1932_v12 = vsub.f32 1.0, %v1931_v61  ;;  %v1827_v50 = vmul.f32 %v3889_v33, %v3889_v33  ;;  %v2005_v57 = vadd.f32 0.112945676, %v2004_v11 }
 0x25b   : > { %v3897_v47 = vmul.f32 0.70710677, %v3875_v5  ;;  %v1919_v4 = vmul.f32 %v1918_v1, %v3754_v29  ;;  %vm1935_vm3 = vweird.f32 %v3846_v41  ;;  %vm3901_vm4 = vcmp.eq.f32.partialorder %v1939_v49, 8.507059e+37 }
 0x25c   : > { %v2253_v23 = vclamps-f32 %v1784_v0, 1.0  ;;  %v1933_v35 = vmul.f32 %v2388_v27, %v1932_v12  ;;  %v3906_v34 = vmul.f32 0.70710677, %v3878_v56  ;;  %v2006_v20 = vmul.f32 %v2005_v57, %v3819_v9  ;;  %vm1937_vm5 = vmor %vm1935_vm3, %vm1936_vm2 }
 0x25d   : > { %v3909_v2 = vmin.f32 %v1827_v50, 16.0  ;;  %v1942_v51 = vor.u32 1.1754944e-38, %v1941_v37  ;;  %v1958_v62 = vadd.f32 1.1283791, %v1957_v17  ;;  %v1995_v29 = vmul.f32 %v1994_v43, %v3819_v9  ;;  %v4144_v43 = vld [vmem:[#allocation17_spill] sm:$0xff] }
 0x25e   : > { %v2067_v53 = vadd.f32 1.0, %v2253_v23  ;;  %v1934_v19 = vadd.f32 %v2388_v27, %v1933_v35  ;;  %v1867_v41 = vmul.f32 %v3897_v47, %v3897_v47  ;;  %v2007_v32 = vadd.f32 0.4994258, %v2006_v20 }
 0x25f   : > { %v2390_v25 = vpop.eup %2389  ;;  %v1829_v24 = vmul.f32 2.1237322e-06, %v3909_v2  ;;  %v1979_v18 = vand.u32 2147483647, %v3884_v46  ;;  %v1981_v48 = vand.u32 2147483648, %v3884_v46  ;;  %v1959_v60 = vmul.f32 %v1958_v62, %v3787_v40 }
 0x260   : > { %v2075_v30 = vmul.f32 %v2067_v53, %v3857_v55  ;;  %v1938_v6 = vsel %vm1937_vm5, %v2388_v27, %v1934_v19  ;;  %v1971_v7 = vmul.f32 %v2390_v25, %v3884_v46  ;;  %v2008_v36 = vmul.f32 %v2007_v32, %v3819_v9 }
 0x261   : > { %v1943_v28 = vsel %vm3901_vm4, %v1942_v51, %v1938_v6  ;;  %v2027_v55 = vmul.f32 %v3906_v34, %v3906_v34  ;;  %v1830_v31 = vadd.f32 0.00028619796, %v1829_v24  ;;  %v1840_v14 = vmul.f32 3.8918573e-05, %v3909_v2 }
 0x262   : > { %v2083_v16 = vadd.f32 %v2075_v30, %v4143_v45  ;;  %v1944_v26 = vmul.f32 %v1943_v28, %v1919_v4  ;;  %v1972_v3 = vsub.f32 1.0, %v1971_v7  ;;  %v3927_v52 = vmin.f32 %v1867_v41, 16.0 }
 0x263   : > { %vm1976_vm6 = vweird.f32 %v2390_v25  ;;  %v1996_v10 = vadd.f32 0.18741608, %v1995_v29  ;;  %v3930_v58 = vadd.f32 1.0, %v2008_v36  ;;  %v1841_v42 = vadd.f32 0.001143296, %v1840_v14 }
 0x264   : > { %2091 = vst [vmem:[%s3853_s12] sm:$0xff] %v2083_v16  ;;  %v2257_v59 = vclamps-f32 %v1944_v26, 1.0  ;;  %v1973_v27 = vmul.f32 %v2390_v25, %v1972_v3  ;;  %v1869_v8 = vmul.f32 2.1237322e-06, %v3927_v52  ;;  %v1880_v15 = vmul.f32 3.8918573e-05, %v3927_v52 }
 0x265   : > { %vm1975_vm7 = vweird.f32 %v3884_v46  ;;  %2391 = vrcp.f32 %v3930_v58  ;;  %v1831_v61 = vmul.f32 %v1830_v31, %v3909_v2  ;;  %v1842_v39 = vmul.f32 %v1841_v42, %v3909_v2 }
 0x266   : > { %v2071_v22 = vadd.f32 1.0, %v2257_v59  ;;  %v1974_v1 = vadd.f32 %v2390_v25, %v1973_v27  ;;  %v3939_v49 = vmin.f32 %v2027_v55, 16.0  ;;  %vm1977_vm8 = vmor %vm1975_vm7, %vm1976_vm6  ;;  %v1982_v0 = vor.u32 1.1754944e-38, %v1981_v48 }
 0x267   : > { %v1870_v12 = vadd.f32 0.00028619796, %v1869_v8  ;;  %v1881_v37 = vadd.f32 0.001143296, %v1880_v15  ;;  %vm1980_vm9 = vcmp.eq.f32.partialorder %v1979_v18, 8.507059e+37  ;;  %v1997_v46 = vmul.f32 %v1996_v10, %v3819_v9  ;;  %v4145_v10 = vld [vmem:[#allocation19_spill] sm:$0xff] }
 0x268   : > { %v2079_v11 = vmul.f32 %v2071_v22, %v3861_v13  ;;  %v1978_v40 = vsel %vm1977_vm8, %v2390_v25, %v1974_v1  ;;  %v1843_v17 = vadd.f32 0.014752088, %v1842_v39  ;;  %v1832_v13 = vadd.f32 0.0036580483, %v1831_v61 }
 0x269   : > { %v1983_v23 = vsel %vm1980_vm9, %v1982_v0, %v1978_v40  ;;  %v1871_v35 = vmul.f32 %v1870_v12, %v3927_v52  ;;  %v1882_v57 = vmul.f32 %v1881_v37, %v3927_v52  ;;  %v2029_v53 = vmul.f32 2.1237322e-06, %v3939_v49 }
 0x26a   : > { %v2087_v50 = vadd.f32 %v2079_v11, %v4144_v43  ;;  %v1984_v4 = vmul.f32 %v1983_v23, %v1959_v60  ;;  %v1844_v54 = vmul.f32 %v1843_v17, %v3909_v2  ;;  %v1736_v20 = vmul.f32 0.5, %v3775_v21 }
 0x26b   : > { %v2392_v19 = vpop.eup %2391  ;;  %v1883_v51 = vadd.f32 0.014752088, %v1882_v57  ;;  %v1998_v62 = vadd.f32 1.1283791, %v1997_v46  ;;  %v1872_v41 = vadd.f32 0.0036580483, %v1871_v35  ;;  %v1833_v7 = vmul.f32 %v1832_v13, %v3909_v2 }
 0x26c   : > { %2095 = vst [vmem:[%s3853_s12 + $0x20] sm:$0xff] %v2087_v50  ;;  %v2258_v9 = vclamps-f32 %v1984_v4, 1.0  ;;  %v2011_v29 = vmul.f32 %v2392_v19, %v3930_v58  ;;  %v2019_v25 = vand.u32 2147483647, %v3930_v58  ;;  %v1845_v30 = vadd.f32 0.112945676, %v1844_v54 }
 0x26d   : > { %v1884_v6 = vmul.f32 %v1883_v51, %v3927_v52  ;;  %v2030_v32 = vadd.f32 0.00028619796, %v2029_v53  ;;  %v2040_v18 = vmul.f32 3.8918573e-05, %v3939_v49  ;;  %vm2016_vm10 = vweird.f32 %v2392_v19 }
 0x26e   : > { %v2012_v24 = vsub.f32 1.0, %v2011_v29  ;;  %v2072_v28 = vadd.f32 1.0, %v2258_v9  ;;  %v2021_v21 = vand.u32 2147483648, %v3930_v58  ;;  %v1846_v48 = vmul.f32 %v1845_v30, %v3909_v2 }
 0x26f   : > { %v1885_v45 = vadd.f32 0.112945676, %v1884_v6  ;;  %v1873_v36 = vmul.f32 %v1872_v41, %v3927_v52  ;;  %v2041_v55 = vadd.f32 0.001143296, %v2040_v18  ;;  %vm2015_vm13 = vweird.f32 %v3930_v58 }
 0x270   : > { %v2013_v16 = vmul.f32 %v2392_v19, %v2012_v24  ;;  %v2080_v26 = vmul.f32 %v2072_v28, %v1736_v20  ;;  %v1847_v3 = vadd.f32 0.4994258, %v1846_v48  ;;  %v2031_v14 = vmul.f32 %v2030_v32, %v3939_v49  ;;  %vm2017_vm11 = vmor %vm2015_vm13, %vm2016_vm10 }
 0x271   : > { %v1886_v31 = vmul.f32 %v1885_v45, %v3927_v52  ;;  %v1834_v42 = vadd.f32 0.05243302, %v1833_v7  ;;  %v2042_v8 = vmul.f32 %v2041_v55, %v3939_v49  ;;  %v1999_v15 = vmul.f32 %v1998_v62, %v3797_v63  ;;  %v4146_v62 = vld [vmem:[#allocation21_spill] sm:$0xff] }
 0x272   : > { %v2014_v59 = vadd.f32 %v2392_v19, %v2013_v16  ;;  %v2088_v27 = vadd.f32 %v2080_v26, %v4145_v10  ;;  %v2022_v22 = vor.u32 1.1754944e-38, %v2021_v21  ;;  %v1848_v60 = vmul.f32 %v1847_v3, %v3909_v2 }
 0x273   : > { %v1887_v1 = vadd.f32 0.4994258, %v1886_v31  ;;  %vm2020_vm12 = vcmp.eq.f32.partialorder %v2019_v25, 8.507059e+37  ;;  %v1874_v61 = vadd.f32 0.05243302, %v1873_v36  ;;  %v1835_v46 = vmul.f32 %v1834_v42, %v3909_v2 }
 0x274   : > { %v2018_v58 = vsel %vm2017_vm11, %v2392_v19, %v2014_v59  ;;  %2096 = vst [vmem:[%s3853_s12 + $0x28] sm:$0xff] %v2088_v27  ;;  %v2043_v39 = vadd.f32 0.014752088, %v2042_v8  ;;  %v1849_v0 = vadd.f32 1.0, %v1848_v60  ;;  %v2032_v37 = vadd.f32 0.0036580483, %v2031_v14 }
 0x275   : > { %v2023_v11 = vsel %vm2020_vm12, %v2022_v22, %v2018_v58  ;;  %v1888_v12 = vmul.f32 %v1887_v1, %v3927_v52  ;;  %v1875_v43 = vmul.f32 %v1874_v61, %v3927_v52  ;;  %v1737_v57 = vmul.f32 0.5, %v3779_v44 }
 0x276   : > { %v2024_v40 = vmul.f32 %v2023_v11, %v1999_v15  ;;  %v2044_v63 = vmul.f32 %v2043_v39, %v3939_v49  ;;  %2393 = vrcp.f32 %v1849_v0  ;;  %v2033_v23 = vmul.f32 %v2032_v37, %v3939_v49 }
 0x277   : > { %v1889_v50 = vadd.f32 1.0, %v1888_v12  ;;  %v1836_v13 = vadd.f32 0.18741608, %v1835_v46  ;;  %v1876_v19 = vadd.f32 0.18741608, %v1875_v43  ;;  %v1861_v32 = vand.u32 2147483648, %v1849_v0 }
 0x278   : > { %v2259_v17 = vclamps-f32 %v2024_v40, 1.0  ;;  %v2045_v35 = vadd.f32 0.112945676, %v2044_v63  ;;  %v2034_v51 = vadd.f32 0.05243302, %v2033_v23  ;;  %vm1855_vm15 = vweird.f32 %v1849_v0  ;;  %v4147_v23 = vld [vmem:[#allocation20_spill] sm:$0xff] }
 0x279   : > { %2395 = vrcp.f32 %v1889_v50  ;;  %v1837_v41 = vmul.f32 %v1836_v13, %v3909_v2  ;;  %v1877_v24 = vmul.f32 %v1876_v19, %v3927_v52  ;;  %v1859_v45 = vand.u32 2147483647, %v1849_v0 }
 0x27a   : > { %v2073_v4 = vadd.f32 1.0, %v2259_v17  ;;  %v2046_v54 = vmul.f32 %v2045_v35, %v3939_v49  ;;  %v2035_v7 = vmul.f32 %v2034_v51, %v3939_v49  ;;  %v1862_v26 = vor.u32 1.1754944e-38, %v1861_v32 }
 0x27b   : > { %v1838_v21 = vadd.f32 1.1283791, %v1837_v41  ;;  %v1878_v36 = vadd.f32 1.1283791, %v1877_v24  ;;  %v1901_v55 = vand.u32 2147483648, %v1889_v50  ;;  %vm1860_vm2 = vcmp.eq.f32.partialorder %v1859_v45, 8.507059e+37 }
 0x27c   : > { %v2081_v53 = vmul.f32 %v2073_v4, %v1737_v57  ;;  %v2394_v20 = vpop.eup %2393  ;;  %v2047_v9 = vadd.f32 0.4994258, %v2046_v54  ;;  %v1899_v31 = vand.u32 2147483647, %v1889_v50  ;;  %v2036_v52 = vadd.f32 0.18741608, %v2035_v7 }
 0x27d   : > { %v1851_v25 = vmul.f32 %v2394_v20, %v1849_v0  ;;  %vm1856_vm14 = vweird.f32 %v2394_v20  ;;  %v1839_v14 = vmul.f32 %v1838_v21, %v3889_v33  ;;  %vm1895_vm3 = vweird.f32 %v1889_v50 }
 0x27e   : > { %v2089_v29 = vadd.f32 %v2081_v53, %v4146_v62  ;;  %v2048_v30 = vmul.f32 %v2047_v9, %v3939_v49  ;;  %vm1857_vm0 = vmor %vm1855_vm15, %vm1856_vm14  ;;  %v1902_v8 = vor.u32 1.1754944e-38, %v1901_v55  ;;  %v1879_v22 = vmul.f32 %v1878_v36, %v3897_v47  ;;  %v4148_v53 = vld [vmem:[#allocation23_spill] sm:$0xff]  ;;  %v4149_v62 = vld [vmem:[#allocation24_spill] sm:$0xff] }
 0x27f   : > { %v2396_v6 = vpop.eup %2395  ;;  %v1852_v44 = vsub.f32 1.0, %v1851_v25  ;;  %vm1900_vm5 = vcmp.eq.f32.partialorder %v1899_v31, 8.507059e+37  ;;  %v2037_v1 = vmul.f32 %v2036_v52, %v3939_v49  ;;  %v1733_v33 = vmul.f32 0.5, %v3873_v38 }
 0x280   : > { %2097 = vst [vmem:[%s3853_s12 + $0x30] sm:$0xff] %v2089_v29  ;;  %v1891_v28 = vmul.f32 %v2396_v6, %v1889_v50  ;;  %v2049_v18 = vadd.f32 1.0, %v2048_v30  ;;  %vm1896_vm1 = vweird.f32 %v2396_v6  ;;  %v1734_v43 = vmul.f32 0.5, %v3875_v5 }
 0x281   : > { %v1853_v48 = vmul.f32 %v2394_v20, %v1852_v44  ;;  %vm1897_vm4 = vmor %vm1895_vm3, %vm1896_vm1  ;;  %v2038_v40 = vadd.f32 1.1283791, %v2037_v1  ;;  %v1738_v51 = vmul.f32 0.5, %v3878_v56 }
 0x282   : > { %v1892_v16 = vsub.f32 1.0, %v1891_v28  ;;  %2397 = vrcp.f32 %v2049_v18  ;;  %v2061_v46 = vand.u32 2147483648, %v2049_v18  ;;  %v2059_v17 = vand.u32 2147483647, %v2049_v18 }
 0x283   : > { %v1854_v2 = vadd.f32 %v2394_v20, %v1853_v48  ;;  %vm2055_vm7 = vweird.f32 %v2049_v18  ;;  %v2039_v4 = vmul.f32 %v2038_v40, %v3906_v34 }
 0x284   : > { %v1893_v3 = vmul.f32 %v2396_v6, %v1892_v16  ;;  %v2062_v38 = vor.u32 1.1754944e-38, %v2061_v46  ;;  %vm2060_vm9 = vcmp.eq.f32.partialorder %v2059_v17, 8.507059e+37 }
 0x285   : > { %v1858_v59 = vsel %vm1857_vm0, %v2394_v20, %v1854_v2 }
 0x286   : > { %v1863_v10 = vsel %vm1860_vm2, %v1862_v26, %v1858_v59  ;;  %v1894_v27 = vadd.f32 %v2396_v6, %v1893_v3 }
 0x287   : > { %v1864_v42 = vmul.f32 %v1863_v10, %v1839_v14 }
 0x288   : > { %v2398_v15 = vpop.eup %2397  ;;  %v1898_v60 = vsel %vm1897_vm4, %v2396_v6, %v1894_v27 }
 0x289   : > { %v2255_v58 = vclamps-f32 %v1864_v42, 1.0  ;;  %v1903_v61 = vsel %vm1900_vm5, %v1902_v8, %v1898_v60  ;;  %v2051_v39 = vmul.f32 %v2398_v15, %v2049_v18  ;;  %vm2056_vm6 = vweird.f32 %v2398_v15 }
 0x28a   : > { %v1904_v11 = vmul.f32 %v1903_v61, %v1879_v22  ;;  %vm2057_vm8 = vmor %vm2055_vm7, %vm2056_vm6 }
 0x28b   : > { %v2052_v0 = vsub.f32 1.0, %v2051_v39  ;;  %v2069_v12 = vadd.f32 1.0, %v2255_v58 }
 0x28c   : > { %v2256_v37 = vclamps-f32 %v1904_v11, 1.0 }
 0x28d   : > { %v2053_v63 = vmul.f32 %v2398_v15, %v2052_v0  ;;  %v2077_v47 = vmul.f32 %v2069_v12, %v1733_v33 }
 0x28e   : > { %v2070_v49 = vadd.f32 1.0, %v2256_v37 }
 0x28f   : > { %v2054_v50 = vadd.f32 %v2398_v15, %v2053_v63  ;;  %v2085_v35 = vadd.f32 %v2077_v47, %v4147_v23 }
 0x290   : > { %v2078_v57 = vmul.f32 %v2070_v49, %v1734_v43 }
 0x291   : > { %v2058_v13 = vsel %vm2057_vm8, %v2398_v15, %v2054_v50  ;;  %2093 = vst [vmem:[%s3853_s12 + $0x10] sm:$0xff] %v2085_v35 }
 0x292   : > { %v2063_v54 = vsel %vm2060_vm9, %v2062_v38, %v2058_v13  ;;  %v2086_v5 = vadd.f32 %v2078_v57, %v4148_v53 }
 0x293   : > { %v2064_v19 = vmul.f32 %v2063_v54, %v2039_v4 }
 0x294   : > { %2094 = vst [vmem:[%s3853_s12 + $0x18] sm:$0xff] %v2086_v5 }
 0x295   : > { %v2260_v20 = vclamps-f32 %v2064_v19, 1.0 }
 0x297   : > { %v2074_v34 = vadd.f32 1.0, %v2260_v20 }
 0x299   : > { %v2082_v9 = vmul.f32 %v2074_v34, %v1738_v51 }
 0x29b   : > { %v2090_v29 = vadd.f32 %v2082_v9, %v4149_v62 }
 0x29d   : > { %2098 = vst [vmem:[%s3853_s12 + $0x38] sm:$0xff] %v2090_v29 }
 0x29e   : > { %2576 = shalt.err (!%p2573_p10)
}
 0x29f   : > { %s2633_s28 = smov 512  }
 0x2a0   : > { %2289 = dma.vmem_to_hbm [thread:$0]  (%p2754_p3), %s2114_s7, 1024, %s2116_s23, %s2100_s22, %s2633_s28, %s2633_s28, %s2632_s29  }
 0x2a1 PF: > { %s2130_s12 = sand.u32 1, %s2611_s18   ;;  %p4150_p12 = scmp.ge.s32.totalorder %s2623_s21, 2 }
 0x2a2   : > { %s2131_s30 = scalar_lea.sflag [#allocation4], %s2130_s12 }
 0x2a3   : > { %p2309_p13 = pnand %p4150_p12, %p2699_p6 }
 0x2a5   : > { %p2310_p0 = pneg %p2309_p13 }
 0x2a7   : > { %2606 = dma.done.wait (%p2310_p0), %s2131_s30, 1024  }
 0x2a8   : > { %2608 = vsyncadd (%p2310_p0), %s2131_s30, 4294966272  ;;  %p20_p5 = scmp.ge.s32.totalorder %s2744_s9, 4   ;;  %s4151_s18 = smov %s2615_s19 }
 0x2a9   : > { %s4152_s19 = smov %s2619_s20  ;;  %s4153_s20 = smov %s2760_s15 }
 0x2aa   : > { %s4154_s21 = smov %s2744_s9  ;;  %22 = sbr.rel (!%p20_p5) target bundleno = 7 (0x7), region = 101 }
 0x2af   :  { %2137 = vsyncpa [#allocation3], 1 }
 0x2b0   :  { %2139 = vsyncpa [#allocation3 + $0x1], 1 }
 0x2b1   :  { %2140 = vsyncpa [#allocation6], 1 }
 0x2b2   :  { %2141 = vsyncpa [#allocation9], 1 }
 0x2b3   :  { %2142 = vsyncpa [#allocation4], 1 }
 0x2b4   :  { %2144 = vsyncpa [#allocation4 + $0x1], 1 }

</bundles_post_ra>
